<compile_context>
chip_gen: v6e
topology: v6e:2x2x1
jax: 0.10.0
libtpu: 0.0.40
codegen_flags: <defaults>
</compile_context>

<pallas_src>
import numpy as np
import jax
import jax.numpy as jnp
from jax import lax
from jax.experimental import pallas as pl
from jax.experimental.pallas import tpu as pltpu

HIDDEN_SIZE = 30
INPUT_SIZE = 65
OUTPUT_SIZE = 56

# Hardware-aligned padded sizes.
H_PAD = 32            # hidden lanes per gate (4*H_PAD = 128 -> one lane group each)
I_PAD = 128           # input feature lanes
O_PAD = 128           # FC output lanes (lane-dense store)
B_SUBLANE = 8         # sublane multiple for the batch axis
G_PAD = 4 * H_PAD     # 128 gate lanes

# Packed parameter-slab row offsets (everything is 128 lanes wide).
_R_WIH1 = 0
_R_WHH1 = _R_WIH1 + I_PAD          # 128
_R_WIH2 = _R_WHH1 + H_PAD          # 160
_R_WHH2 = _R_WIH2 + H_PAD          # 192
_R_WFC = _R_WHH2 + H_PAD           # 224
_R_BIAS = _R_WFC + H_PAD           # 256  (row 0: b1, row 1: b2, row 2: b_fc)
SLAB_ROWS = _R_BIAS + B_SUBLANE    # 264  (multiple of 8 sublanes)


# ---------------------------------------------------------------------------
# Kernel
# ---------------------------------------------------------------------------
def make_rnn_kernel(T, Bp):
    assert Bp % B_SUBLANE == 0
    Hp = H_PAD
    G = G_PAD

    def rnn_kernel(x_ref, slab_ref, out_ref):
        # ---- one-time loads from the packed parameter slab (2 input DMAs total)
        w_ih1 = slab_ref[_R_WIH1:_R_WIH1 + I_PAD, :]      # (128, 128)
        w_hh1 = slab_ref[_R_WHH1:_R_WHH1 + Hp, :]         # (32, 128)
        w_ih2 = slab_ref[_R_WIH2:_R_WIH2 + Hp, :]         # (32, 128)
        w_hh2 = slab_ref[_R_WHH2:_R_WHH2 + Hp, :]         # (32, 128)
        w_fc = slab_ref[_R_WFC:_R_WFC + Hp, :]            # (32, 128)
        bias = slab_ref[_R_BIAS:_R_BIAS + B_SUBLANE, :]   # (8, 128)
        b1 = bias[0:1, :]                                 # (1, 128)
        b2 = jnp.broadcast_to(bias[1:2, :], (Bp, G))      # hoisted broadcast
        b_fc = bias[2:3, :]                               # (1, 128)

        # ---- hoisted layer-1 input projection: one big matmul, kept in vregs
        gx = jnp.dot(x_ref[...], w_ih1,
                     preferred_element_type=jnp.float32) + b1   # (T*Bp, 128)

        def cell(gates, c):
            # One sigmoid + one tanh over the full 128-lane gate vector, then
            # slice i/f/g/o at 32-lane boundaries (PyTorch order i, f, g, o).
            s = jax.nn.sigmoid(gates)
            tg = jnp.tanh(gates)
            i = s[:, 0 * Hp:1 * Hp]
            f = s[:, 1 * Hp:2 * Hp]
            g = tg[:, 2 * Hp:3 * Hp]
            o = s[:, 3 * Hp:4 * Hp]
            c_new = f * c + i * g
            h_new = o * jnp.tanh(c_new)
            return h_new, c_new

        z = jnp.zeros((Bp, Hp), jnp.float32)
        h1, c1, h2, c2 = z, z, z, z
        h2_steps = []
        # Fully unrolled, value-carried recurrence (static T): no VMEM
        # round-trips, flat DAG so layer-2 of step t overlaps layer-1 of t+1.
        for t in range(T):
            # Layer-2 recurrent dot depends only on h2(t-1) -> independent of
            # layer-1 at step t; scheduler can overlap it.
            g2_rec = jnp.dot(h2, w_hh2, preferred_element_type=jnp.float32)
            # Layer 1: only the recurrent matmul stays on the serial path.
            g1 = gx[t * Bp:(t + 1) * Bp, :] + jnp.dot(
                h1, w_hh1, preferred_element_type=jnp.float32)
            h1, c1 = cell(g1, c1)
            # Layer 2: un-fused input/recurrent dots (no per-step lane concat).
            g2 = jnp.dot(h1, w_ih2,
                         preferred_element_type=jnp.float32) + g2_rec + b2
            h2, c2 = cell(g2, c2)
            h2_steps.append(h2)

        # ---- hoisted ReLU + FC + single lane-dense (128-wide) store
        h_all = jnp.maximum(jnp.concatenate(h2_steps, axis=0), 0.0)  # (T*Bp, 32)
        y = jnp.dot(h_all, w_fc, preferred_element_type=jnp.float32) + b_fc
        out_ref[...] = y.astype(out_ref.dtype)

    return rnn_kernel


# ---------------------------------------------------------------------------
# Host-side padding / packing helpers
# ---------------------------------------------------------------------------
def _pad_gate_cols(w, H, Hp):
    """Pad the 4H gate axis per-gate (i, f, g, o blocks each padded H -> Hp)."""
    r = w.shape[0]
    w = w.reshape(r, 4, H)
    w = jnp.pad(w, ((0, 0), (0, 0), (0, Hp - H)))
    return w.reshape(r, 4 * Hp)


def _pad_rows(w, rows_pad):
    return jnp.pad(w, ((0, rows_pad - w.shape[0]), (0, 0)))


def build_param_slab(params):
    """Pack all padded weights and biases into one (SLAB_ROWS, 128) f32 slab."""
    w_ih1, w_hh1, b1, w_ih2, w_hh2, b2, w_fc, b_fc = params
    H, Hp = HIDDEN_SIZE, H_PAD
    O, Op = OUTPUT_SIZE, O_PAD

    w_ih1_p = _pad_rows(_pad_gate_cols(w_ih1, H, Hp), I_PAD)    # (128, 128)
    w_hh1_p = _pad_rows(_pad_gate_cols(w_hh1, H, Hp), Hp)       # (32, 128)
    w_ih2_p = _pad_rows(_pad_gate_cols(w_ih2, H, Hp), Hp)       # (32, 128)
    w_hh2_p = _pad_rows(_pad_gate_cols(w_hh2, H, Hp), Hp)       # (32, 128)
    w_fc_p = jnp.pad(w_fc, ((0, Hp - H), (0, Op - O)))          # (32, 128)

    b1_p = _pad_gate_cols(b1, H, Hp)                            # (1, 128)
    b2_p = _pad_gate_cols(b2, H, Hp)                            # (1, 128)
    b_fc_p = jnp.pad(b_fc, ((0, 0), (0, Op - O)))               # (1, 128)
    bias_blk = jnp.concatenate(
        [b1_p, b2_p, b_fc_p,
         jnp.zeros((B_SUBLANE - 3, O_PAD), jnp.float32)], axis=0)   # (8, 128)

    slab = jnp.concatenate(
        [w_ih1_p, w_hh1_p, w_ih2_p, w_hh2_p, w_fc_p, bias_blk], axis=0)
    assert slab.shape == (SLAB_ROWS, O_PAD)
    return slab


def rnn_forward(x, params):
    T, B, I = x.shape
    Bp = int(np.ceil(B / B_SUBLANE) * B_SUBLANE)
    x_p = jnp.pad(x, ((0, 0), (0, Bp - B), (0, I_PAD - I)))
    x_flat = x_p.reshape(T * Bp, I_PAD)          # flat, lane-dense kernel input
    slab = build_param_slab(params)

    out = pl.pallas_call(
        make_rnn_kernel(T, Bp),
        out_shape=jax.ShapeDtypeStruct((T * Bp, O_PAD), jnp.float32),
        in_specs=[pl.BlockSpec(memory_space=pltpu.MemorySpace.VMEM),
                  pl.BlockSpec(memory_space=pltpu.MemorySpace.VMEM)],
        out_specs=pl.BlockSpec(memory_space=pltpu.MemorySpace.VMEM),
    )(x_flat, slab)

    return out.reshape(T, Bp, O_PAD)[:, :B, :OUTPUT_SIZE]


# ---------------------------------------------------------------------------
# Parameter init (PyTorch-like U(-1/sqrt(H), 1/sqrt(H))) and pure-JAX reference
# ---------------------------------------------------------------------------
def init_params(key):
    H, I, O = HIDDEN_SIZE, INPUT_SIZE, OUTPUT_SIZE
    k = 1.0 / np.sqrt(H)
    keys = jax.random.split(key, 10)
    u = lambda kk, shape: jax.random.uniform(kk, shape, jnp.float32, -k, k)

    # LSTM 1 (PyTorch stores (4H, in); pre-transpose to (in, 4H) for x @ W)
    w_ih1 = u(keys[0], (4 * H, I)).T
    w_hh1 = u(keys[1], (4 * H, H)).T
    b1 = (u(keys[2], (4 * H,)) + u(keys[3], (4 * H,))).reshape(1, 4 * H)
    # LSTM 2
    w_ih2 = u(keys[4], (4 * H, H)).T
    w_hh2 = u(keys[5], (4 * H, H)).T
    b2 = (u(keys[6], (4 * H,)) + u(keys[7], (4 * H,))).reshape(1, 4 * H)
    # Linear (PyTorch stores (O, H); pre-transpose to (H, O))
    kf = 1.0 / np.sqrt(H)
    w_fc = jax.random.uniform(keys[8], (O, H), jnp.float32, -kf, kf).T
    b_fc = jax.random.uniform(keys[9], (O,), jnp.float32, -kf, kf).reshape(1, O)

    return (w_ih1, w_hh1, b1, w_ih2, w_hh2, b2, w_fc, b_fc)


def rnn_reference(x, params):
    """Pure-JAX reference (same math, unpadded) to sanity-check the kernel.
    Uses precision=HIGHEST so the XLA dots match the kernel's f32 MXU matmuls.
    """
    w_ih1, w_hh1, b1, w_ih2, w_hh2, b2, w_fc, b_fc = params
    T, B, _ = x.shape
    H = HIDDEN_SIZE
    mm = lambda a, b: jnp.dot(a, b, precision=lax.Precision.HIGHEST)

    def cell(x_t, h, c, w_ih, w_hh, b):
        g = mm(x_t, w_ih) + mm(h, w_hh) + b
        i = jax.nn.sigmoid(g[:, 0 * H:1 * H])
        f = jax.nn.sigmoid(g[:, 1 * H:2 * H])
        gg = jnp.tanh(g[:, 2 * H:3 * H])
        o = jax.nn.sigmoid(g[:, 3 * H:4 * H])
        c = f * c + i * gg
        h = o * jnp.tanh(c)
        return h, c

    def scan_step(carry, x_t):
        h1, c1, h2, c2 = carry
        h1, c1 = cell(x_t, h1, c1, w_ih1, w_hh1, b1)
        h2, c2 = cell(h1, h2, c2, w_ih2, w_hh2, b2)
        y = mm(jnp.maximum(h2, 0.0), w_fc) + b_fc
        return (h1, c1, h2, c2), y

    z = jnp.zeros((B, H), jnp.float32)
    _, ys = lax.scan(scan_step, (z, z, z, z), x)
    return ys


if __name__ == "__main__":
    key = jax.random.PRNGKey(0)
    k_x, k_p = jax.random.split(key)

    seq_len, batch = 8, 2
    x = jax.random.normal(k_x, (seq_len, batch, INPUT_SIZE), jnp.float32)
    params = init_params(k_p)

    out = jax.block_until_ready(rnn_forward(x, params))

    ref = jax.block_until_ready(rnn_reference(x, params))
    np.testing.assert_allclose(np.asarray(out), np.asarray(ref),
                               rtol=2e-4, atol=2e-4)
    assert out.shape == (seq_len, batch, OUTPUT_SIZE)

    print("KERNEL_OK")
</pallas_src>

<mosaic_0001>
module attributes {stable_mosaic.version = 11 : i64} {
  func.func @rnn_kernel(%arg0: memref<64x128xf32, #tpu.memory_space<vmem>>, %arg1: memref<264x128xf32, #tpu.memory_space<vmem>>, %arg2: memref<64x128xf32, #tpu.memory_space<vmem>>) attributes {dimension_semantics = [], scalar_prefetch = 0 : i64, scratch_operands = 0 : i64, tpu.core_type = #tpu.core_type<tc>} {
    %c0 = arith.constant 0 : index
    %c0_0 = arith.constant 0 : index
    %0 = vector.load %arg1[%c0, %c0_0] : memref<264x128xf32, #tpu.memory_space<vmem>>, vector<128x128xf32>
    %c128 = arith.constant 128 : index
    %c0_1 = arith.constant 0 : index
    %1 = vector.load %arg1[%c128, %c0_1] : memref<264x128xf32, #tpu.memory_space<vmem>>, vector<32x128xf32>
    %c160 = arith.constant 160 : index
    %c0_2 = arith.constant 0 : index
    %2 = vector.load %arg1[%c160, %c0_2] : memref<264x128xf32, #tpu.memory_space<vmem>>, vector<32x128xf32>
    %c192 = arith.constant 192 : index
    %c0_3 = arith.constant 0 : index
    %3 = vector.load %arg1[%c192, %c0_3] : memref<264x128xf32, #tpu.memory_space<vmem>>, vector<32x128xf32>
    %c224 = arith.constant 224 : index
    %c0_4 = arith.constant 0 : index
    %4 = vector.load %arg1[%c224, %c0_4] : memref<264x128xf32, #tpu.memory_space<vmem>>, vector<32x128xf32>
    %c256 = arith.constant 256 : index
    %c0_5 = arith.constant 0 : index
    %5 = vector.load %arg1[%c256, %c0_5] : memref<264x128xf32, #tpu.memory_space<vmem>>, vector<8x128xf32>
    %6 = vector.extract_strided_slice %5 {offsets = [0, 0], sizes = [1, 128], strides = [1, 1]} : vector<8x128xf32> to vector<1x128xf32>
    %7 = vector.extract_strided_slice %5 {offsets = [1, 0], sizes = [1, 128], strides = [1, 1]} : vector<8x128xf32> to vector<1x128xf32>
    %8 = vector.shape_cast %7 : vector<1x128xf32> to vector<1x128xf32>
    %9 = vector.broadcast %8 : vector<1x128xf32> to vector<8x128xf32>
    %10 = vector.extract_strided_slice %5 {offsets = [2, 0], sizes = [1, 128], strides = [1, 1]} : vector<8x128xf32> to vector<1x128xf32>
    %c0_6 = arith.constant 0 : index
    %c0_7 = arith.constant 0 : index
    %11 = vector.load %arg0[%c0_6, %c0_7] : memref<64x128xf32, #tpu.memory_space<vmem>>, vector<64x128xf32>
    %cst = arith.constant dense<0.000000e+00> : vector<64x128xf32>
    %12 = tpu.matmul %11, %0, %cst {dimension_numbers = #tpu.dot_dimension_numbers<[1], [0], [0], [1], [0, 0, 1, 1], [], []>} : vector<64x128xf32>, vector<128x128xf32>, vector<64x128xf32> -> vector<64x128xf32>
    %13 = vector.broadcast %6 : vector<1x128xf32> to vector<64x128xf32>
    %14 = arith.addf %12, %13 : vector<64x128xf32>
    %cst_8 = arith.constant 0.000000e+00 : f32
    %15 = vector.broadcast %cst_8 : f32 to vector<8x32xf32>
    %cst_9 = arith.constant dense<0.000000e+00> : vector<8x128xf32>
    %16 = tpu.matmul %15, %3, %cst_9 {dimension_numbers = #tpu.dot_dimension_numbers<[1], [0], [0], [1], [0, 0, 1, 1], [], []>} : vector<8x32xf32>, vector<32x128xf32>, vector<8x128xf32> -> vector<8x128xf32>
    %17 = vector.extract_strided_slice %14 {offsets = [0, 0], sizes = [8, 128], strides = [1, 1]} : vector<64x128xf32> to vector<8x128xf32>
    %cst_10 = arith.constant dense<0.000000e+00> : vector<8x128xf32>
    %18 = tpu.matmul %15, %1, %cst_10 {dimension_numbers = #tpu.dot_dimension_numbers<[1], [0], [0], [1], [0, 0, 1, 1], [], []>} : vector<8x32xf32>, vector<32x128xf32>, vector<8x128xf32> -> vector<8x128xf32>
    %19 = arith.addf %17, %18 : vector<8x128xf32>
    %20 = arith.negf %19 : vector<8x128xf32>
    %21 = math.exp %20 : vector<8x128xf32>
    %cst_11 = arith.constant 1.000000e+00 : f32
    %22 = vector.broadcast %cst_11 : f32 to vector<8x128xf32>
    %23 = arith.addf %22, %21 : vector<8x128xf32>
    %24 = arith.divf %22, %23 : vector<8x128xf32>
    %25 = math.tanh %19 : vector<8x128xf32>
    %26 = vector.extract_strided_slice %24 {offsets = [0, 0], sizes = [8, 32], strides = [1, 1]} : vector<8x128xf32> to vector<8x32xf32>
    %27 = vector.extract_strided_slice %24 {offsets = [0, 32], sizes = [8, 32], strides = [1, 1]} : vector<8x128xf32> to vector<8x32xf32>
    %28 = vector.extract_strided_slice %25 {offsets = [0, 64], sizes = [8, 32], strides = [1, 1]} : vector<8x128xf32> to vector<8x32xf32>
    %29 = vector.extract_strided_slice %24 {offsets = [0, 96], sizes = [8, 32], strides = [1, 1]} : vector<8x128xf32> to vector<8x32xf32>
    %30 = arith.mulf %27, %15 : vector<8x32xf32>
    %31 = arith.mulf %26, %28 : vector<8x32xf32>
    %32 = arith.addf %30, %31 : vector<8x32xf32>
    %33 = math.tanh %32 : vector<8x32xf32>
    %34 = arith.mulf %29, %33 : vector<8x32xf32>
    %cst_12 = arith.constant dense<0.000000e+00> : vector<8x128xf32>
    %35 = tpu.matmul %34, %2, %cst_12 {dimension_numbers = #tpu.dot_dimension_numbers<[1], [0], [0], [1], [0, 0, 1, 1], [], []>} : vector<8x32xf32>, vector<32x128xf32>, vector<8x128xf32> -> vector<8x128xf32>
    %36 = arith.addf %35, %16 : vector<8x128xf32>
    %37 = arith.addf %36, %9 : vector<8x128xf32>
    %38 = arith.negf %37 : vector<8x128xf32>
    %39 = math.exp %38 : vector<8x128xf32>
    %cst_13 = arith.constant 1.000000e+00 : f32
    %40 = vector.broadcast %cst_13 : f32 to vector<8x128xf32>
    %41 = arith.addf %40, %39 : vector<8x128xf32>
    %42 = arith.divf %40, %41 : vector<8x128xf32>
    %43 = math.tanh %37 : vector<8x128xf32>
    %44 = vector.extract_strided_slice %42 {offsets = [0, 0], sizes = [8, 32], strides = [1, 1]} : vector<8x128xf32> to vector<8x32xf32>
    %45 = vector.extract_strided_slice %42 {offsets = [0, 32], sizes = [8, 32], strides = [1, 1]} : vector<8x128xf32> to vector<8x32xf32>
    %46 = vector.extract_strided_slice %43 {offsets = [0, 64], sizes = [8, 32], strides = [1, 1]} : vector<8x128xf32> to vector<8x32xf32>
    %47 = vector.extract_strided_slice %42 {offsets = [0, 96], sizes = [8, 32], strides = [1, 1]} : vector<8x128xf32> to vector<8x32xf32>
    %48 = arith.mulf %45, %15 : vector<8x32xf32>
    %49 = arith.mulf %44, %46 : vector<8x32xf32>
    %50 = arith.addf %48, %49 : vector<8x32xf32>
    %51 = math.tanh %50 : vector<8x32xf32>
    %52 = arith.mulf %47, %51 : vector<8x32xf32>
    %cst_14 = arith.constant dense<0.000000e+00> : vector<8x128xf32>
    %53 = tpu.matmul %52, %3, %cst_14 {dimension_numbers = #tpu.dot_dimension_numbers<[1], [0], [0], [1], [0, 0, 1, 1], [], []>} : vector<8x32xf32>, vector<32x128xf32>, vector<8x128xf32> -> vector<8x128xf32>
    %54 = vector.extract_strided_slice %14 {offsets = [8, 0], sizes = [8, 128], strides = [1, 1]} : vector<64x128xf32> to vector<8x128xf32>
    %cst_15 = arith.constant dense<0.000000e+00> : vector<8x128xf32>
    %55 = tpu.matmul %34, %1, %cst_15 {dimension_numbers = #tpu.dot_dimension_numbers<[1], [0], [0], [1], [0, 0, 1, 1], [], []>} : vector<8x32xf32>, vector<32x128xf32>, vector<8x128xf32> -> vector<8x128xf32>
    %56 = arith.addf %54, %55 : vector<8x128xf32>
    %57 = arith.negf %56 : vector<8x128xf32>
    %58 = math.exp %57 : vector<8x128xf32>
    %cst_16 = arith.constant 1.000000e+00 : f32
    %59 = vector.broadcast %cst_16 : f32 to vector<8x128xf32>
    %60 = arith.addf %59, %58 : vector<8x128xf32>
    %61 = arith.divf %59, %60 : vector<8x128xf32>
    %62 = math.tanh %56 : vector<8x128xf32>
    %63 = vector.extract_strided_slice %61 {offsets = [0, 0], sizes = [8, 32], strides = [1, 1]} : vector<8x128xf32> to vector<8x32xf32>
    %64 = vector.extract_strided_slice %61 {offsets = [0, 32], sizes = [8, 32], strides = [1, 1]} : vector<8x128xf32> to vector<8x32xf32>
    %65 = vector.extract_strided_slice %62 {offsets = [0, 64], sizes = [8, 32], strides = [1, 1]} : vector<8x128xf32> to vector<8x32xf32>
    %66 = vector.extract_strided_slice %61 {offsets = [0, 96], sizes = [8, 32], strides = [1, 1]} : vector<8x128xf32> to vector<8x32xf32>
    %67 = arith.mulf %64, %32 : vector<8x32xf32>
    %68 = arith.mulf %63, %65 : vector<8x32xf32>
    %69 = arith.addf %67, %68 : vector<8x32xf32>
    %70 = math.tanh %69 : vector<8x32xf32>
    %71 = arith.mulf %66, %70 : vector<8x32xf32>
    %cst_17 = arith.constant dense<0.000000e+00> : vector<8x128xf32>
    %72 = tpu.matmul %71, %2, %cst_17 {dimension_numbers = #tpu.dot_dimension_numbers<[1], [0], [0], [1], [0, 0, 1, 1], [], []>} : vector<8x32xf32>, vector<32x128xf32>, vector<8x128xf32> -> vector<8x128xf32>
    %73 = arith.addf %72, %53 : vector<8x128xf32>
    %74 = arith.addf %73, %9 : vector<8x128xf32>
    %75 = arith.negf %74 : vector<8x128xf32>
    %76 = math.exp %75 : vector<8x128xf32>
    %cst_18 = arith.constant 1.000000e+00 : f32
    %77 = vector.broadcast %cst_18 : f32 to vector<8x128xf32>
    %78 = arith.addf %77, %76 : vector<8x128xf32>
    %79 = arith.divf %77, %78 : vector<8x128xf32>
    %80 = math.tanh %74 : vector<8x128xf32>
    %81 = vector.extract_strided_slice %79 {offsets = [0, 0], sizes = [8, 32], strides = [1, 1]} : vector<8x128xf32> to vector<8x32xf32>
    %82 = vector.extract_strided_slice %79 {offsets = [0, 32], sizes = [8, 32], strides = [1, 1]} : vector<8x128xf32> to vector<8x32xf32>
    %83 = vector.extract_strided_slice %80 {offsets = [0, 64], sizes = [8, 32], strides = [1, 1]} : vector<8x128xf32> to vector<8x32xf32>
    %84 = vector.extract_strided_slice %79 {offsets = [0, 96], sizes = [8, 32], strides = [1, 1]} : vector<8x128xf32> to vector<8x32xf32>
    %85 = arith.mulf %82, %50 : vector<8x32xf32>
    %86 = arith.mulf %81, %83 : vector<8x32xf32>
    %87 = arith.addf %85, %86 : vector<8x32xf32>
    %88 = math.tanh %87 : vector<8x32xf32>
    %89 = arith.mulf %84, %88 : vector<8x32xf32>
    %cst_19 = arith.constant dense<0.000000e+00> : vector<8x128xf32>
    %90 = tpu.matmul %89, %3, %cst_19 {dimension_numbers = #tpu.dot_dimension_numbers<[1], [0], [0], [1], [0, 0, 1, 1], [], []>} : vector<8x32xf32>, vector<32x128xf32>, vector<8x128xf32> -> vector<8x128xf32>
    %91 = vector.extract_strided_slice %14 {offsets = [16, 0], sizes = [8, 128], strides = [1, 1]} : vector<64x128xf32> to vector<8x128xf32>
    %cst_20 = arith.constant dense<0.000000e+00> : vector<8x128xf32>
    %92 = tpu.matmul %71, %1, %cst_20 {dimension_numbers = #tpu.dot_dimension_numbers<[1], [0], [0], [1], [0, 0, 1, 1], [], []>} : vector<8x32xf32>, vector<32x128xf32>, vector<8x128xf32> -> vector<8x128xf32>
    %93 = arith.addf %91, %92 : vector<8x128xf32>
    %94 = arith.negf %93 : vector<8x128xf32>
    %95 = math.exp %94 : vector<8x128xf32>
    %cst_21 = arith.constant 1.000000e+00 : f32
    %96 = vector.broadcast %cst_21 : f32 to vector<8x128xf32>
    %97 = arith.addf %96, %95 : vector<8x128xf32>
    %98 = arith.divf %96, %97 : vector<8x128xf32>
    %99 = math.tanh %93 : vector<8x128xf32>
    %100 = vector.extract_strided_slice %98 {offsets = [0, 0], sizes = [8, 32], strides = [1, 1]} : vector<8x128xf32> to vector<8x32xf32>
    %101 = vector.extract_strided_slice %98 {offsets = [0, 32], sizes = [8, 32], strides = [1, 1]} : vector<8x128xf32> to vector<8x32xf32>
    %102 = vector.extract_strided_slice %99 {offsets = [0, 64], sizes = [8, 32], strides = [1, 1]} : vector<8x128xf32> to vector<8x32xf32>
    %103 = vector.extract_strided_slice %98 {offsets = [0, 96], sizes = [8, 32], strides = [1, 1]} : vector<8x128xf32> to vector<8x32xf32>
    %104 = arith.mulf %101, %69 : vector<8x32xf32>
    %105 = arith.mulf %100, %102 : vector<8x32xf32>
    %106 = arith.addf %104, %105 : vector<8x32xf32>
    %107 = math.tanh %106 : vector<8x32xf32>
    %108 = arith.mulf %103, %107 : vector<8x32xf32>
    %cst_22 = arith.constant dense<0.000000e+00> : vector<8x128xf32>
    %109 = tpu.matmul %108, %2, %cst_22 {dimension_numbers = #tpu.dot_dimension_numbers<[1], [0], [0], [1], [0, 0, 1, 1], [], []>} : vector<8x32xf32>, vector<32x128xf32>, vector<8x128xf32> -> vector<8x128xf32>
    %110 = arith.addf %109, %90 : vector<8x128xf32>
    %111 = arith.addf %110, %9 : vector<8x128xf32>
    %112 = arith.negf %111 : vector<8x128xf32>
    %113 = math.exp %112 : vector<8x128xf32>
    %cst_23 = arith.constant 1.000000e+00 : f32
    %114 = vector.broadcast %cst_23 : f32 to vector<8x128xf32>
    %115 = arith.addf %114, %113 : vector<8x128xf32>
    %116 = arith.divf %114, %115 : vector<8x128xf32>
    %117 = math.tanh %111 : vector<8x128xf32>
    %118 = vector.extract_strided_slice %116 {offsets = [0, 0], sizes = [8, 32], strides = [1, 1]} : vector<8x128xf32> to vector<8x32xf32>
    %119 = vector.extract_strided_slice %116 {offsets = [0, 32], sizes = [8, 32], strides = [1, 1]} : vector<8x128xf32> to vector<8x32xf32>
    %120 = vector.extract_strided_slice %117 {offsets = [0, 64], sizes = [8, 32], strides = [1, 1]} : vector<8x128xf32> to vector<8x32xf32>
    %121 = vector.extract_strided_slice %116 {offsets = [0, 96], sizes = [8, 32], strides = [1, 1]} : vector<8x128xf32> to vector<8x32xf32>
    %122 = arith.mulf %119, %87 : vector<8x32xf32>
    %123 = arith.mulf %118, %120 : vector<8x32xf32>
    %124 = arith.addf %122, %123 : vector<8x32xf32>
    %125 = math.tanh %124 : vector<8x32xf32>
    %126 = arith.mulf %121, %125 : vector<8x32xf32>
    %cst_24 = arith.constant dense<0.000000e+00> : vector<8x128xf32>
    %127 = tpu.matmul %126, %3, %cst_24 {dimension_numbers = #tpu.dot_dimension_numbers<[1], [0], [0], [1], [0, 0, 1, 1], [], []>} : vector<8x32xf32>, vector<32x128xf32>, vector<8x128xf32> -> vector<8x128xf32>
    %128 = vector.extract_strided_slice %14 {offsets = [24, 0], sizes = [8, 128], strides = [1, 1]} : vector<64x128xf32> to vector<8x128xf32>
    %cst_25 = arith.constant dense<0.000000e+00> : vector<8x128xf32>
    %129 = tpu.matmul %108, %1, %cst_25 {dimension_numbers = #tpu.dot_dimension_numbers<[1], [0], [0], [1], [0, 0, 1, 1], [], []>} : vector<8x32xf32>, vector<32x128xf32>, vector<8x128xf32> -> vector<8x128xf32>
    %130 = arith.addf %128, %129 : vector<8x128xf32>
    %131 = arith.negf %130 : vector<8x128xf32>
    %132 = math.exp %131 : vector<8x128xf32>
    %cst_26 = arith.constant 1.000000e+00 : f32
    %133 = vector.broadcast %cst_26 : f32 to vector<8x128xf32>
    %134 = arith.addf %133, %132 : vector<8x128xf32>
    %135 = arith.divf %133, %134 : vector<8x128xf32>
    %136 = math.tanh %130 : vector<8x128xf32>
    %137 = vector.extract_strided_slice %135 {offsets = [0, 0], sizes = [8, 32], strides = [1, 1]} : vector<8x128xf32> to vector<8x32xf32>
    %138 = vector.extract_strided_slice %135 {offsets = [0, 32], sizes = [8, 32], strides = [1, 1]} : vector<8x128xf32> to vector<8x32xf32>
    %139 = vector.extract_strided_slice %136 {offsets = [0, 64], sizes = [8, 32], strides = [1, 1]} : vector<8x128xf32> to vector<8x32xf32>
    %140 = vector.extract_strided_slice %135 {offsets = [0, 96], sizes = [8, 32], strides = [1, 1]} : vector<8x128xf32> to vector<8x32xf32>
    %141 = arith.mulf %138, %106 : vector<8x32xf32>
    %142 = arith.mulf %137, %139 : vector<8x32xf32>
    %143 = arith.addf %141, %142 : vector<8x32xf32>
    %144 = math.tanh %143 : vector<8x32xf32>
    %145 = arith.mulf %140, %144 : vector<8x32xf32>
    %cst_27 = arith.constant dense<0.000000e+00> : vector<8x128xf32>
    %146 = tpu.matmul %145, %2, %cst_27 {dimension_numbers = #tpu.dot_dimension_numbers<[1], [0], [0], [1], [0, 0, 1, 1], [], []>} : vector<8x32xf32>, vector<32x128xf32>, vector<8x128xf32> -> vector<8x128xf32>
    %147 = arith.addf %146, %127 : vector<8x128xf32>
    %148 = arith.addf %147, %9 : vector<8x128xf32>
    %149 = arith.negf %148 : vector<8x128xf32>
    %150 = math.exp %149 : vector<8x128xf32>
    %cst_28 = arith.constant 1.000000e+00 : f32
    %151 = vector.broadcast %cst_28 : f32 to vector<8x128xf32>
    %152 = arith.addf %151, %150 : vector<8x128xf32>
    %153 = arith.divf %151, %152 : vector<8x128xf32>
    %154 = math.tanh %148 : vector<8x128xf32>
    %155 = vector.extract_strided_slice %153 {offsets = [0, 0], sizes = [8, 32], strides = [1, 1]} : vector<8x128xf32> to vector<8x32xf32>
    %156 = vector.extract_strided_slice %153 {offsets = [0, 32], sizes = [8, 32], strides = [1, 1]} : vector<8x128xf32> to vector<8x32xf32>
    %157 = vector.extract_strided_slice %154 {offsets = [0, 64], sizes = [8, 32], strides = [1, 1]} : vector<8x128xf32> to vector<8x32xf32>
    %158 = vector.extract_strided_slice %153 {offsets = [0, 96], sizes = [8, 32], strides = [1, 1]} : vector<8x128xf32> to vector<8x32xf32>
    %159 = arith.mulf %156, %124 : vector<8x32xf32>
    %160 = arith.mulf %155, %157 : vector<8x32xf32>
    %161 = arith.addf %159, %160 : vector<8x32xf32>
    %162 = math.tanh %161 : vector<8x32xf32>
    %163 = arith.mulf %158, %162 : vector<8x32xf32>
    %cst_29 = arith.constant dense<0.000000e+00> : vector<8x128xf32>
    %164 = tpu.matmul %163, %3, %cst_29 {dimension_numbers = #tpu.dot_dimension_numbers<[1], [0], [0], [1], [0, 0, 1, 1], [], []>} : vector<8x32xf32>, vector<32x128xf32>, vector<8x128xf32> -> vector<8x128xf32>
    %165 = vector.extract_strided_slice %14 {offsets = [32, 0], sizes = [8, 128], strides = [1, 1]} : vector<64x128xf32> to vector<8x128xf32>
    %cst_30 = arith.constant dense<0.000000e+00> : vector<8x128xf32>
    %166 = tpu.matmul %145, %1, %cst_30 {dimension_numbers = #tpu.dot_dimension_numbers<[1], [0], [0], [1], [0, 0, 1, 1], [], []>} : vector<8x32xf32>, vector<32x128xf32>, vector<8x128xf32> -> vector<8x128xf32>
    %167 = arith.addf %165, %166 : vector<8x128xf32>
    %168 = arith.negf %167 : vector<8x128xf32>
    %169 = math.exp %168 : vector<8x128xf32>
    %cst_31 = arith.constant 1.000000e+00 : f32
    %170 = vector.broadcast %cst_31 : f32 to vector<8x128xf32>
    %171 = arith.addf %170, %169 : vector<8x128xf32>
    %172 = arith.divf %170, %171 : vector<8x128xf32>
    %173 = math.tanh %167 : vector<8x128xf32>
    %174 = vector.extract_strided_slice %172 {offsets = [0, 0], sizes = [8, 32], strides = [1, 1]} : vector<8x128xf32> to vector<8x32xf32>
    %175 = vector.extract_strided_slice %172 {offsets = [0, 32], sizes = [8, 32], strides = [1, 1]} : vector<8x128xf32> to vector<8x32xf32>
    %176 = vector.extract_strided_slice %173 {offsets = [0, 64], sizes = [8, 32], strides = [1, 1]} : vector<8x128xf32> to vector<8x32xf32>
    %177 = vector.extract_strided_slice %172 {offsets = [0, 96], sizes = [8, 32], strides = [1, 1]} : vector<8x128xf32> to vector<8x32xf32>
    %178 = arith.mulf %175, %143 : vector<8x32xf32>
    %179 = arith.mulf %174, %176 : vector<8x32xf32>
    %180 = arith.addf %178, %179 : vector<8x32xf32>
    %181 = math.tanh %180 : vector<8x32xf32>
    %182 = arith.mulf %177, %181 : vector<8x32xf32>
    %cst_32 = arith.constant dense<0.000000e+00> : vector<8x128xf32>
    %183 = tpu.matmul %182, %2, %cst_32 {dimension_numbers = #tpu.dot_dimension_numbers<[1], [0], [0], [1], [0, 0, 1, 1], [], []>} : vector<8x32xf32>, vector<32x128xf32>, vector<8x128xf32> -> vector<8x128xf32>
    %184 = arith.addf %183, %164 : vector<8x128xf32>
    %185 = arith.addf %184, %9 : vector<8x128xf32>
    %186 = arith.negf %185 : vector<8x128xf32>
    %187 = math.exp %186 : vector<8x128xf32>
    %cst_33 = arith.constant 1.000000e+00 : f32
    %188 = vector.broadcast %cst_33 : f32 to vector<8x128xf32>
    %189 = arith.addf %188, %187 : vector<8x128xf32>
    %190 = arith.divf %188, %189 : vector<8x128xf32>
    %191 = math.tanh %185 : vector<8x128xf32>
    %192 = vector.extract_strided_slice %190 {offsets = [0, 0], sizes = [8, 32], strides = [1, 1]} : vector<8x128xf32> to vector<8x32xf32>
    %193 = vector.extract_strided_slice %190 {offsets = [0, 32], sizes = [8, 32], strides = [1, 1]} : vector<8x128xf32> to vector<8x32xf32>
    %194 = vector.extract_strided_slice %191 {offsets = [0, 64], sizes = [8, 32], strides = [1, 1]} : vector<8x128xf32> to vector<8x32xf32>
    %195 = vector.extract_strided_slice %190 {offsets = [0, 96], sizes = [8, 32], strides = [1, 1]} : vector<8x128xf32> to vector<8x32xf32>
    %196 = arith.mulf %193, %161 : vector<8x32xf32>
    %197 = arith.mulf %192, %194 : vector<8x32xf32>
    %198 = arith.addf %196, %197 : vector<8x32xf32>
    %199 = math.tanh %198 : vector<8x32xf32>
    %200 = arith.mulf %195, %199 : vector<8x32xf32>
    %cst_34 = arith.constant dense<0.000000e+00> : vector<8x128xf32>
    %201 = tpu.matmul %200, %3, %cst_34 {dimension_numbers = #tpu.dot_dimension_numbers<[1], [0], [0], [1], [0, 0, 1, 1], [], []>} : vector<8x32xf32>, vector<32x128xf32>, vector<8x128xf32> -> vector<8x128xf32>
    %202 = vector.extract_strided_slice %14 {offsets = [40, 0], sizes = [8, 128], strides = [1, 1]} : vector<64x128xf32> to vector<8x128xf32>
    %cst_35 = arith.constant dense<0.000000e+00> : vector<8x128xf32>
    %203 = tpu.matmul %182, %1, %cst_35 {dimension_numbers = #tpu.dot_dimension_numbers<[1], [0], [0], [1], [0, 0, 1, 1], [], []>} : vector<8x32xf32>, vector<32x128xf32>, vector<8x128xf32> -> vector<8x128xf32>
    %204 = arith.addf %202, %203 : vector<8x128xf32>
    %205 = arith.negf %204 : vector<8x128xf32>
    %206 = math.exp %205 : vector<8x128xf32>
    %cst_36 = arith.constant 1.000000e+00 : f32
    %207 = vector.broadcast %cst_36 : f32 to vector<8x128xf32>
    %208 = arith.addf %207, %206 : vector<8x128xf32>
    %209 = arith.divf %207, %208 : vector<8x128xf32>
    %210 = math.tanh %204 : vector<8x128xf32>
    %211 = vector.extract_strided_slice %209 {offsets = [0, 0], sizes = [8, 32], strides = [1, 1]} : vector<8x128xf32> to vector<8x32xf32>
    %212 = vector.extract_strided_slice %209 {offsets = [0, 32], sizes = [8, 32], strides = [1, 1]} : vector<8x128xf32> to vector<8x32xf32>
    %213 = vector.extract_strided_slice %210 {offsets = [0, 64], sizes = [8, 32], strides = [1, 1]} : vector<8x128xf32> to vector<8x32xf32>
    %214 = vector.extract_strided_slice %209 {offsets = [0, 96], sizes = [8, 32], strides = [1, 1]} : vector<8x128xf32> to vector<8x32xf32>
    %215 = arith.mulf %212, %180 : vector<8x32xf32>
    %216 = arith.mulf %211, %213 : vector<8x32xf32>
    %217 = arith.addf %215, %216 : vector<8x32xf32>
    %218 = math.tanh %217 : vector<8x32xf32>
    %219 = arith.mulf %214, %218 : vector<8x32xf32>
    %cst_37 = arith.constant dense<0.000000e+00> : vector<8x128xf32>
    %220 = tpu.matmul %219, %2, %cst_37 {dimension_numbers = #tpu.dot_dimension_numbers<[1], [0], [0], [1], [0, 0, 1, 1], [], []>} : vector<8x32xf32>, vector<32x128xf32>, vector<8x128xf32> -> vector<8x128xf32>
    %221 = arith.addf %220, %201 : vector<8x128xf32>
    %222 = arith.addf %221, %9 : vector<8x128xf32>
    %223 = arith.negf %222 : vector<8x128xf32>
    %224 = math.exp %223 : vector<8x128xf32>
    %cst_38 = arith.constant 1.000000e+00 : f32
    %225 = vector.broadcast %cst_38 : f32 to vector<8x128xf32>
    %226 = arith.addf %225, %224 : vector<8x128xf32>
    %227 = arith.divf %225, %226 : vector<8x128xf32>
    %228 = math.tanh %222 : vector<8x128xf32>
    %229 = vector.extract_strided_slice %227 {offsets = [0, 0], sizes = [8, 32], strides = [1, 1]} : vector<8x128xf32> to vector<8x32xf32>
    %230 = vector.extract_strided_slice %227 {offsets = [0, 32], sizes = [8, 32], strides = [1, 1]} : vector<8x128xf32> to vector<8x32xf32>
    %231 = vector.extract_strided_slice %228 {offsets = [0, 64], sizes = [8, 32], strides = [1, 1]} : vector<8x128xf32> to vector<8x32xf32>
    %232 = vector.extract_strided_slice %227 {offsets = [0, 96], sizes = [8, 32], strides = [1, 1]} : vector<8x128xf32> to vector<8x32xf32>
    %233 = arith.mulf %230, %198 : vector<8x32xf32>
    %234 = arith.mulf %229, %231 : vector<8x32xf32>
    %235 = arith.addf %233, %234 : vector<8x32xf32>
    %236 = math.tanh %235 : vector<8x32xf32>
    %237 = arith.mulf %232, %236 : vector<8x32xf32>
    %cst_39 = arith.constant dense<0.000000e+00> : vector<8x128xf32>
    %238 = tpu.matmul %237, %3, %cst_39 {dimension_numbers = #tpu.dot_dimension_numbers<[1], [0], [0], [1], [0, 0, 1, 1], [], []>} : vector<8x32xf32>, vector<32x128xf32>, vector<8x128xf32> -> vector<8x128xf32>
    %239 = vector.extract_strided_slice %14 {offsets = [48, 0], sizes = [8, 128], strides = [1, 1]} : vector<64x128xf32> to vector<8x128xf32>
    %cst_40 = arith.constant dense<0.000000e+00> : vector<8x128xf32>
    %240 = tpu.matmul %219, %1, %cst_40 {dimension_numbers = #tpu.dot_dimension_numbers<[1], [0], [0], [1], [0, 0, 1, 1], [], []>} : vector<8x32xf32>, vector<32x128xf32>, vector<8x128xf32> -> vector<8x128xf32>
    %241 = arith.addf %239, %240 : vector<8x128xf32>
    %242 = arith.negf %241 : vector<8x128xf32>
    %243 = math.exp %242 : vector<8x128xf32>
    %cst_41 = arith.constant 1.000000e+00 : f32
    %244 = vector.broadcast %cst_41 : f32 to vector<8x128xf32>
    %245 = arith.addf %244, %243 : vector<8x128xf32>
    %246 = arith.divf %244, %245 : vector<8x128xf32>
    %247 = math.tanh %241 : vector<8x128xf32>
    %248 = vector.extract_strided_slice %246 {offsets = [0, 0], sizes = [8, 32], strides = [1, 1]} : vector<8x128xf32> to vector<8x32xf32>
    %249 = vector.extract_strided_slice %246 {offsets = [0, 32], sizes = [8, 32], strides = [1, 1]} : vector<8x128xf32> to vector<8x32xf32>
    %250 = vector.extract_strided_slice %247 {offsets = [0, 64], sizes = [8, 32], strides = [1, 1]} : vector<8x128xf32> to vector<8x32xf32>
    %251 = vector.extract_strided_slice %246 {offsets = [0, 96], sizes = [8, 32], strides = [1, 1]} : vector<8x128xf32> to vector<8x32xf32>
    %252 = arith.mulf %249, %217 : vector<8x32xf32>
    %253 = arith.mulf %248, %250 : vector<8x32xf32>
    %254 = arith.addf %252, %253 : vector<8x32xf32>
    %255 = math.tanh %254 : vector<8x32xf32>
    %256 = arith.mulf %251, %255 : vector<8x32xf32>
    %cst_42 = arith.constant dense<0.000000e+00> : vector<8x128xf32>
    %257 = tpu.matmul %256, %2, %cst_42 {dimension_numbers = #tpu.dot_dimension_numbers<[1], [0], [0], [1], [0, 0, 1, 1], [], []>} : vector<8x32xf32>, vector<32x128xf32>, vector<8x128xf32> -> vector<8x128xf32>
    %258 = arith.addf %257, %238 : vector<8x128xf32>
    %259 = arith.addf %258, %9 : vector<8x128xf32>
    %260 = arith.negf %259 : vector<8x128xf32>
    %261 = math.exp %260 : vector<8x128xf32>
    %cst_43 = arith.constant 1.000000e+00 : f32
    %262 = vector.broadcast %cst_43 : f32 to vector<8x128xf32>
    %263 = arith.addf %262, %261 : vector<8x128xf32>
    %264 = arith.divf %262, %263 : vector<8x128xf32>
    %265 = math.tanh %259 : vector<8x128xf32>
    %266 = vector.extract_strided_slice %264 {offsets = [0, 0], sizes = [8, 32], strides = [1, 1]} : vector<8x128xf32> to vector<8x32xf32>
    %267 = vector.extract_strided_slice %264 {offsets = [0, 32], sizes = [8, 32], strides = [1, 1]} : vector<8x128xf32> to vector<8x32xf32>
    %268 = vector.extract_strided_slice %265 {offsets = [0, 64], sizes = [8, 32], strides = [1, 1]} : vector<8x128xf32> to vector<8x32xf32>
    %269 = vector.extract_strided_slice %264 {offsets = [0, 96], sizes = [8, 32], strides = [1, 1]} : vector<8x128xf32> to vector<8x32xf32>
    %270 = arith.mulf %267, %235 : vector<8x32xf32>
    %271 = arith.mulf %266, %268 : vector<8x32xf32>
    %272 = arith.addf %270, %271 : vector<8x32xf32>
    %273 = math.tanh %272 : vector<8x32xf32>
    %274 = arith.mulf %269, %273 : vector<8x32xf32>
    %cst_44 = arith.constant dense<0.000000e+00> : vector<8x128xf32>
    %275 = tpu.matmul %274, %3, %cst_44 {dimension_numbers = #tpu.dot_dimension_numbers<[1], [0], [0], [1], [0, 0, 1, 1], [], []>} : vector<8x32xf32>, vector<32x128xf32>, vector<8x128xf32> -> vector<8x128xf32>
    %276 = vector.extract_strided_slice %14 {offsets = [56, 0], sizes = [8, 128], strides = [1, 1]} : vector<64x128xf32> to vector<8x128xf32>
    %cst_45 = arith.constant dense<0.000000e+00> : vector<8x128xf32>
    %277 = tpu.matmul %256, %1, %cst_45 {dimension_numbers = #tpu.dot_dimension_numbers<[1], [0], [0], [1], [0, 0, 1, 1], [], []>} : vector<8x32xf32>, vector<32x128xf32>, vector<8x128xf32> -> vector<8x128xf32>
    %278 = arith.addf %276, %277 : vector<8x128xf32>
    %279 = arith.negf %278 : vector<8x128xf32>
    %280 = math.exp %279 : vector<8x128xf32>
    %cst_46 = arith.constant 1.000000e+00 : f32
    %281 = vector.broadcast %cst_46 : f32 to vector<8x128xf32>
    %282 = arith.addf %281, %280 : vector<8x128xf32>
    %283 = arith.divf %281, %282 : vector<8x128xf32>
    %284 = math.tanh %278 : vector<8x128xf32>
    %285 = vector.extract_strided_slice %283 {offsets = [0, 0], sizes = [8, 32], strides = [1, 1]} : vector<8x128xf32> to vector<8x32xf32>
    %286 = vector.extract_strided_slice %283 {offsets = [0, 32], sizes = [8, 32], strides = [1, 1]} : vector<8x128xf32> to vector<8x32xf32>
    %287 = vector.extract_strided_slice %284 {offsets = [0, 64], sizes = [8, 32], strides = [1, 1]} : vector<8x128xf32> to vector<8x32xf32>
    %288 = vector.extract_strided_slice %283 {offsets = [0, 96], sizes = [8, 32], strides = [1, 1]} : vector<8x128xf32> to vector<8x32xf32>
    %289 = arith.mulf %286, %254 : vector<8x32xf32>
    %290 = arith.mulf %285, %287 : vector<8x32xf32>
    %291 = arith.addf %289, %290 : vector<8x32xf32>
    %292 = math.tanh %291 : vector<8x32xf32>
    %293 = arith.mulf %288, %292 : vector<8x32xf32>
    %cst_47 = arith.constant dense<0.000000e+00> : vector<8x128xf32>
    %294 = tpu.matmul %293, %2, %cst_47 {dimension_numbers = #tpu.dot_dimension_numbers<[1], [0], [0], [1], [0, 0, 1, 1], [], []>} : vector<8x32xf32>, vector<32x128xf32>, vector<8x128xf32> -> vector<8x128xf32>
    %295 = arith.addf %294, %275 : vector<8x128xf32>
    %296 = arith.addf %295, %9 : vector<8x128xf32>
    %297 = arith.negf %296 : vector<8x128xf32>
    %298 = math.exp %297 : vector<8x128xf32>
    %cst_48 = arith.constant 1.000000e+00 : f32
    %299 = vector.broadcast %cst_48 : f32 to vector<8x128xf32>
    %300 = arith.addf %299, %298 : vector<8x128xf32>
    %301 = arith.divf %299, %300 : vector<8x128xf32>
    %302 = math.tanh %296 : vector<8x128xf32>
    %303 = vector.extract_strided_slice %301 {offsets = [0, 0], sizes = [8, 32], strides = [1, 1]} : vector<8x128xf32> to vector<8x32xf32>
    %304 = vector.extract_strided_slice %301 {offsets = [0, 32], sizes = [8, 32], strides = [1, 1]} : vector<8x128xf32> to vector<8x32xf32>
    %305 = vector.extract_strided_slice %302 {offsets = [0, 64], sizes = [8, 32], strides = [1, 1]} : vector<8x128xf32> to vector<8x32xf32>
    %306 = vector.extract_strided_slice %301 {offsets = [0, 96], sizes = [8, 32], strides = [1, 1]} : vector<8x128xf32> to vector<8x32xf32>
    %307 = arith.mulf %304, %272 : vector<8x32xf32>
    %308 = arith.mulf %303, %305 : vector<8x32xf32>
    %309 = arith.addf %307, %308 : vector<8x32xf32>
    %310 = math.tanh %309 : vector<8x32xf32>
    %311 = arith.mulf %306, %310 : vector<8x32xf32>
    %312 = tpu.concatenate %52, %89, %126, %163, %200, %237, %274, %311 in 0 : vector<8x32xf32>, vector<8x32xf32>, vector<8x32xf32>, vector<8x32xf32>, vector<8x32xf32>, vector<8x32xf32>, vector<8x32xf32>, vector<8x32xf32> -> vector<64x32xf32>
    %cst_49 = arith.constant 0.000000e+00 : f32
    %313 = vector.broadcast %cst_49 : f32 to vector<64x32xf32>
    %314 = arith.maximumf %312, %313 : vector<64x32xf32>
    %cst_50 = arith.constant dense<0.000000e+00> : vector<64x128xf32>
    %315 = tpu.matmul %314, %4, %cst_50 {dimension_numbers = #tpu.dot_dimension_numbers<[1], [0], [0], [1], [0, 0, 1, 1], [], []>} : vector<64x32xf32>, vector<32x128xf32>, vector<64x128xf32> -> vector<64x128xf32>
    %316 = vector.broadcast %10 : vector<1x128xf32> to vector<64x128xf32>
    %317 = arith.addf %315, %316 : vector<64x128xf32>
    %c0_51 = arith.constant 0 : index
    %c0_52 = arith.constant 0 : index
    %318 = vector.load %arg2[%c0_51, %c0_52] : memref<64x128xf32, #tpu.memory_space<vmem>>, vector<64x128xf32>
    tpu.vector_store %arg2[%c0_51, %c0_52], %317 {strides = array<i32>} : memref<64x128xf32, #tpu.memory_space<vmem>>, vector<64x128xf32>,
    return
  }
}

</mosaic_0001>

<bundles_post_ra>
// kernel: tpu_custom_call.1
= control target key start
LH: loop header
LB: loop body
LE: loop exit
PB: predicated region body
PF: predicated region fallthrough
CT: control target
= control target key end

     0   :  { %7 = vsyncpa [#allocation3], 0  ;;  %s3829_s0 = inlined_call_operand.hbm [shape: f32[64,128], index: 0, kind: input, shape index: {}]   ;;  %s3830_s1 = inlined_call_operand.hbm [shape: f32[264,128], index: 1, kind: input, shape index: {}]   ;;  %s3831_s2 = inlined_call_operand.hbm [shape: f32[64,128], index: 2, kind: output, shape index: {}]  }
   0x1   :  { %8 = vsyncpa [#allocation6], 0 }
   0x2   :  { %9 = vsyncpa [#allocation4], 0  ;;  %s3278_s9 = smov [#allocation2]  }
   0x3   :  { %s15_s10 = sshll.u32 %s3278_s9, 4  ;;  %s16_s10 = int_to_ptr.vmem [resolvable:$true] %s15_s10 }
   0x4   :  { %s3220_s11 = scalar_lea.vmem %s16_s10, 1024  ;;  %p3225_p1 = scmp.lt.s32.totalorder %s16_s10, %s16_s10 }
   0x5   :  { %p3221_p0 = scmp.ne.s32.totalorder %s16_s10, %s3220_s11  ;;  %p3226_p2 = scmp.lt.s32.totalorder %s3220_s11, %s3220_s11 }
   0x7   :  { %p3227_p3 = por %p3226_p2, %p3225_p1 }
   0x9   :  { %p3228_p4 = pnand %p3227_p3, %p3221_p0 }
   0xb   :  { %3231 = shalt.err (!%p3228_p4)
}
   0xc   :  { %s3279_s12 = smov 128   ;;  %s3280_s13 = smov 8  }
   0xd   :  { %21 = dma.hbm_to_vmem [thread:$0]  %s3829_s0, 1024, %s16_s10, [#allocation3], %s3279_s12, %s3279_s12, %s3280_s13  }
   0xe   :  { %s3281_s16 = smov [#allocation5]  }
   0xf   :  { %s27_s17 = sshll.u32 %s3281_s16, 4  ;;  %s28_s17 = int_to_ptr.vmem [resolvable:$true] %s27_s17 }
  0x10   :  { %s3240_s18 = scalar_lea.vmem %s28_s17, 4224  ;;  %p3245_p6 = scmp.lt.s32.totalorder %s28_s17, %s28_s17 }
  0x11   :  { %p3241_p5 = scmp.ne.s32.totalorder %s28_s17, %s3240_s18  ;;  %p3246_p7 = scmp.lt.s32.totalorder %s3240_s18, %s3240_s18 }
  0x13   :  { %p3247_p8 = por %p3246_p7, %p3245_p6 }
  0x15   :  { %p3248_p9 = pnand %p3247_p8, %p3241_p5 }
  0x17   :  { %3251 = shalt.err (!%p3248_p9)
}
  0x18   :  { %33 = dma.hbm_to_vmem [thread:$0]  %s3830_s1, 4224, %s28_s17, [#allocation6], %s3279_s12, %s3279_s12, %s3280_s13  }
  0x19   :  { %3272 = dma.done.wait [#allocation3], 1024  }
  0x1a   :  { %3273 = vsyncadd [#allocation3], 4294966272 }
  0x1b   :  { %3274 = dma.done.wait [#allocation6], 4224  }
  0x1c   :  { %3275 = vsyncadd [#allocation6], 4294963072  ;;  %v3282_v0 = vmov 0.0   ;;  %vm3283_vm0 = vmmov 0   ;;  %v55_v1 = vld [vmem:[#allocation5 + $0x78] sm:$0xff]  ;;  %v54_v2 = vld [vmem:[#allocation5 + $0x70] sm:$0xff]  ;;  %v73_v25 = vlaneseq }
  0x1d   :  { %2793 = vmatprep.subr.mxu1 %v3282_v0  ;;  %2801 = vmatprep.mubr.msk.f32.mxu1 %vm3283_vm0, %v3282_v0  ;;  %v53_v3 = vld [vmem:[#allocation5 + $0x68] sm:$0xff]  ;;  %v52_v4 = vld [vmem:[#allocation5 + $0x60] sm:$0xff]  ;;  %v3317_v5 = vld [vmem:[#allocation5 + $0x98] sm:$0xff]  ;;  %s3284_s0 = smov 64   ;;  %s3285_s1 = smov 32   ;;  %vm194_vm1 = vcmask 261120  }
  0x1e   :  { %2738 = vmatprep.subr.mxu0 %v55_v1  ;;  %2794 = vmatpush3.msra.mxu1 %v3317_v5  ;;  %v3320_v6 = vld [vmem:[#allocation5 + $0x90] sm:$0xff]  ;;  %v51_v7 = vld [vmem:[#allocation5 + $0x58] sm:$0xff]  ;;  %v77_v8 = vld [vmem:[#allocation2] sm:$0xff]  ;;  %v3337_v26 = vshrl.u32 %v73_v25, 7  ;;  %s3286_s21 = smov [#allocation7]  }
  0x1f   :  { %2739 = vmatpush3.msra.mxu0 %v55_v1  ;;  %2795 = vmatprep.subr.mxu1 %v3282_v0  ;;  %v3324_v9 = vld [vmem:[#allocation5 + $0x88] sm:$0xff]  ;;  %v50_v10 = vld [vmem:[#allocation5 + $0x50] sm:$0xff]  ;;  %v3327_v11 = vld [vmem:[#allocation5 + $0x80] sm:$0xff]  ;;  %s2523_s22 = sshll.u32 %s3286_s21, 4  ;;  %s2524_s22 = int_to_ptr.vmem [resolvable:$true] %s2523_s22 }
  0x20   :  { %2740 = vmatprep.subr.mxu0 %v54_v2  ;;  %2796 = vmatpush3.msra.mxu1 %v3320_v6  ;;  %v49_v12 = vld [vmem:[#allocation5 + $0x48] sm:$0xff]  ;;  %v48_v13 = vld [vmem:[#allocation5 + $0x40] sm:$0xff]  ;;  %v47_v14 = vld [vmem:[#allocation5 + $0x38] sm:$0xff]  ;;  %v87_v27 = vsub.s32 0, %v3337_v26  ;;  %s3252_s23 = scalar_lea.vmem %s2524_s22, 1024  ;;  %p3257_p11 = scmp.lt.s32.totalorder %s2524_s22, %s2524_s22 }
  0x21   :  { %2741 = vmatpush3.msra.mxu0 %v54_v2  ;;  %2797 = vmatprep.subr.mxu1 %v3282_v0  ;;  %v46_v15 = vld [vmem:[#allocation5 + $0x30] sm:$0xff]  ;;  %v45_v16 = vld [vmem:[#allocation5 + $0x28] sm:$0xff]  ;;  %v44_v17 = vld [vmem:[#allocation5 + $0x20] sm:$0xff]  ;;  %p3253_p10 = scmp.ne.s32.totalorder %s2524_s22, %s3252_s23  ;;  %p3258_p12 = scmp.lt.s32.totalorder %s3252_s23, %s3252_s23 }
  0x22   :  { %2742 = vmatprep.subr.mxu0 %v53_v3  ;;  %2770 = vmatprep.mubr.f32.mxu0 %v77_v8  ;;  %v43_v18 = vld [vmem:[#allocation5 + $0x18] sm:$0xff]  ;;  %v42_v19 = vld [vmem:[#allocation5 + $0x10] sm:$0xff]  ;;  %v41_v20 = vld [vmem:[#allocation5 + $0x8] sm:$0xff] }
  0x23   :  { %2743 = vmatpush3.msra.mxu0 %v53_v3  ;;  %2798 = vmatpush3.msra.mxu1 %v3324_v9  ;;  %v40_v21 = vld [vmem:[#allocation5] sm:$0xff]  ;;  %v78_v22 = vld [vmem:[#allocation2 + $0x8] sm:$0xff]  ;;  %v3353_v44 = vld [vmem:[#allocation5 + $0xd8] sm:$0xff]  ;;  %p3259_p13 = por %p3258_p12, %p3257_p11 }
  0x24   :  { %2744 = vmatprep.subr.mxu0 %v52_v4  ;;  %2799 = vmatprep.subr.mxu1 %v3282_v0  ;;  %v3340_v28 = vld [vmem:[#allocation5 + $0x100] sm:$0xff]  ;;  %v79_v45 = vld [vmem:[#allocation2 + $0x10] sm:$0xff]  ;;  %v80_v46 = vld [vmem:[#allocation2 + $0x18] sm:$0xff] }
  0x25   :  { %2745 = vmatpush3.msra.mxu0 %v52_v4  ;;  %2800 = vmatpush3.msra.mxu1 %v3327_v11  ;;  %v3345_v30 = vrot.slane %v3340_v28, %v87_v27  ;;  %v3356_v47 = vld [vmem:[#allocation5 + $0xd0] sm:$0xff]  ;;  %v81_v48 = vld [vmem:[#allocation2 + $0x20] sm:$0xff]  ;;  %v3359_v49 = vld [vmem:[#allocation5 + $0xc8] sm:$0xff]  ;;  %p3260_p0 = pnand %p3259_p13, %p3253_p10 }
  0x26   :  { %2746 = vmatprep.subr.mxu0 %v51_v7  ;;  %2802 = vmatmul.mubr.f32.vlgmr.msra.gmra.mxu1 %v3282_v0  ;;  %v3361_v50 = vld [vmem:[#allocation5 + $0xb8] sm:$0xff]  ;;  %v82_v51 = vld [vmem:[#allocation2 + $0x28] sm:$0xff]  ;;  %v83_v52 = vld [vmem:[#allocation2 + $0x30] sm:$0xff] }
  0x27   :  { %2747 = vmatpush3.msra.mxu0 %v51_v7  ;;  %2804 = vmatprep.subr.mxu1 %v3282_v0  ;;  %v3366_v53 = vld [vmem:[#allocation5 + $0xb0] sm:$0xff]  ;;  %v3370_v54 = vld [vmem:[#allocation5 + $0xc0] sm:$0xff]  ;;  %v3373_v55 = vld [vmem:[#allocation5 + $0xa8] sm:$0xff] }
  0x28   :  { %2748 = vmatprep.subr.mxu0 %v50_v10  ;;  %2812 = vmatprep.mubr.msk.f32.mxu1 %vm3283_vm0, %v3282_v0  ;;  %v84_v56 = vld [vmem:[#allocation2 + $0x38] sm:$0xff]  ;;  %v3379_v57 = vld [vmem:[#allocation5 + $0xa0] sm:$0xff] }
  0x29   :  { %2749 = vmatpush3.msra.mxu0 %v50_v10  ;;  %2805 = vmatpush3.msra.mxu1 %v3361_v50  ;;  %v75_v10 = vsub.s32 1, %v3337_v26 }
  0x2a   :  { %2750 = vmatprep.subr.mxu0 %v49_v12  ;;  %2806 = vmatprep.subr.mxu1 %v3282_v0 }
  0x2b   :  { %2751 = vmatpush3.msra.mxu0 %v49_v12  ;;  %2807 = vmatpush3.msra.mxu1 %v3366_v53  ;;  %v3425_v12 = vrot.slane %v3340_v28, %v75_v10 }
  0x2c   :  { %2752 = vmatprep.subr.mxu0 %v48_v13  ;;  %2808 = vmatprep.subr.mxu1 %v3282_v0 }
  0x2d   :  { %2753 = vmatpush3.msra.mxu0 %v48_v13  ;;  %2809 = vmatpush3.msra.mxu1 %v3373_v55 }
  0x2e   :  { %2754 = vmatprep.subr.mxu0 %v47_v14  ;;  %2810 = vmatprep.subr.mxu1 %v3282_v0 }
  0x2f   :  { %2755 = vmatpush3.msra.mxu0 %v47_v14  ;;  %2811 = vmatpush3.msra.mxu1 %v3379_v57 }
  0x30   :  { %2756 = vmatprep.subr.mxu0 %v46_v15  ;;  %2815 = vmatprep.subr.mxu1 %v3282_v0 }
  0x31   :  { %2757 = vmatpush3.msra.mxu0 %v46_v15 }
  0x32   :  { %2758 = vmatprep.subr.mxu0 %v45_v16 }
  0x33   :  { %2759 = vmatpush3.msra.mxu0 %v45_v16 }
  0x34   :  { %2760 = vmatprep.subr.mxu0 %v44_v17 }
  0x35   :  { %2761 = vmatpush3.msra.mxu0 %v44_v17 }
  0x36   :  { %2762 = vmatprep.subr.mxu0 %v43_v18 }
  0x37   :  { %2763 = vmatpush3.msra.mxu0 %v43_v18 }
  0x38   :  { %2764 = vmatprep.subr.mxu0 %v42_v19 }
  0x39   :  { %2765 = vmatpush3.msra.mxu0 %v42_v19 }
  0x3a   :  { %2766 = vmatprep.subr.mxu0 %v41_v20 }
  0x3b   :  { %2767 = vmatpush3.msra.mxu0 %v41_v20 }
  0x3c   :  { %2768 = vmatprep.subr.mxu0 %v40_v21 }
  0x3d   :  { %2769 = vmatpush3.msra.mxu0 %v40_v21 }
  0x3e   :  { %2771 = vmatmul.mubr.f32.vlgmr.msra.gmra.mxu0 %v78_v22  ;;  %2782 = vmatprep.subr.mxu0 %v3282_v0 }
  0x3f   :  { %2783 = vmatpush3.msra.mxu0 %v3353_v44  ;;  %2773 = vmatprep.mubr.f32.mxu0 %v79_v45 }
  0x40   :  { %2784 = vmatprep.subr.mxu0 %v3282_v0 }
  0x41   :  { %2785 = vmatpush3.msra.mxu0 %v3356_v47 }
  0x42   :  { %2774 = vmatmul.mubr.f32.gmra.mxu0 %v80_v46  ;;  %2786 = vmatprep.subr.mxu0 %v3282_v0 }
  0x43   :  { %2776 = vmatprep.mubr.f32.mxu0 %v81_v48  ;;  %2787 = vmatpush3.msra.mxu0 %v3359_v49 }
  0x44   :  { %2788 = vmatprep.subr.mxu0 %v3282_v0 }
  0x45   :  { %2789 = vmatpush3.msra.mxu0 %v3370_v54 }
  0x46   :  { %2777 = vmatmul.mubr.f32.gmra.mxu0 %v82_v51  ;;  %2837 = vmatprep.subr.mxu0 %v3282_v0 }
  0x47   :  { %2779 = vmatprep.mubr.f32.mxu0 %v83_v52 }
  0x4a   :  { %2780 = vmatmul.mubr.f32.gmra.mxu0 %v84_v56 }
  0x4b   :  { %2790 = vmatprep.mubr.msk.f32.mxu0 %vm3283_vm0, %v3282_v0 }
  0x4e   :  { %2791 = vmatmul.mubr.f32.vlgmr.msra.gmra.mxu0 %v3282_v0 }
  0x4f   :  { %2838 = vmatpush3.msra.mxu0 %v3361_v50  ;;  %2845 = vmatprep.mubr.msk.f32.mxu0 %vm3283_vm0, %v3282_v0 }
  0x50   :  { %2839 = vmatprep.subr.mxu0 %v3282_v0 }
  0x51   :  { %2840 = vmatpush3.msra.mxu0 %v3366_v53 }
  0x52   :  { %2841 = vmatprep.subr.mxu0 %v3282_v0 }
  0x53   :  { %2842 = vmatpush3.msra.mxu0 %v3373_v55 }
  0x54   :  { %2843 = vmatprep.subr.mxu0 %v3282_v0 }
  0x55   :  { %2844 = vmatpush3.msra.mxu0 %v3379_v57 }
  0x56   :  { %2859 = vmatprep.subr.mxu0 %v3282_v0 }
  0xe6   :  { %v334_v23 = vpop.f32.mrf.mxu1 }
  0xe8   :  { %v2803_v24 = vpop.f32.mrf.mxu1 }
  0xfe   :  { %v3342_v29 = vpop.f32.mrf.mxu0 }
 0x100   :  { %v155_v31 = vpop.f32.mrf.mxu0 }
 0x101   :  { %v156_v32 = vadd.f32 %v155_v31, %v3345_v30 }
 0x102   :  { %v3400_v61 = vpop.f32.mrf.mxu0 }
 0x103   :  { %v338_v33 = vadd.f32 %v334_v23, %v156_v32 }
 0x104   :  { %v3402_v62 = vpop.f32.mrf.mxu0 }
 0x105   :  { %3075 = vtanh.f32 %v338_v33  ;;  %v2536_v35 = vmul.f32 -1.442695, %v338_v33 }
 0x106   :  { %v3404_v63 = vpop.f32.mrf.mxu0 }
 0x107   :  { %3077 = vpow2.f32 %v2536_v35 }
 0x108   :  { %v3406_v1 = vpop.f32.mrf.mxu0 }
 0x10a   :  { %v3408_v2 = vpop.f32.mrf.mxu0 }
 0x10c   :  { %v3410_v3 = vpop.f32.mrf.mxu0 }
 0x10e   :  { %v264_v4 = vpop.f32.mrf.mxu0 }
 0x110   :  { %v2792_v7 = vpop.f32.mrf.mxu0 }
 0x112   :  { %v3076_v34 = vpop.eup %3075 }
 0x113   :  { %348 = vrot.lane.b32.xlu0 %v3076_v34, %s3284_s0 }
 0x114   :  { %v3078_v36 = vpop.eup %3077 }
 0x115   :  { %v342_v37 = vadd.f32 1.0, %v3078_v36  ;;  %v161_v36 = vadd.f32 %v3342_v29, %v3345_v30 }
 0x117   :  { %3079 = vrcp.f32 %v342_v37 }
 0x124   :  { %v3080_v38 = vpop.eup %3079 }
 0x125   :  { %v346_v41 = vmul.f32 0.0, %v3080_v38 }
 0x185   :  { %v349_v39 = vpop.permute.xlu0 %348 }
 0x186   :  { %v351_v40 = vmul.f32 %v3080_v38, %v349_v39 }
 0x188   :  { %353 = vrot.lane.b32.xlu0 %v351_v40, %s3285_s1 }
 0x1fa   :  { %v354_v42 = vpop.permute.xlu0 %353 }
 0x1fb   :  { %v3350_v43 = vadd.f32 %v354_v42, %v346_v41 }
 0x1fd   :  { %3081 = vtanh.f32 %v3350_v43 }
 0x20a   :  { %v3082_v58 = vpop.eup %3081 }
 0x20b   :  { %359 = vrot.lane.b32.xlu1 %v3082_v58, %s3284_s0 }
 0x27d   :  { %v360_v59 = vpop.permute.xlu1 %359 }
 0x27e   :  { %v362_v60 = vmul.f32 %v3080_v38, %v360_v59 }
 0x280   :  { %364 = vrot.lane.b32.xlu1 %v362_v60, %s3285_s1 }
 0x2f2   :  { %v365_v8 = vpop.permute.xlu1 %364 }
 0x2f3   :  { %2813 = vmatmul.mubr.msk.f32.vlgmr.msra.gmra.mxu1 %vm194_vm1, %v365_v8 }
 0x2f4   :  { %2816 = vmatpush3.msra.mxu1 %v3353_v44  ;;  %2823 = vmatprep.mubr.msk.f32.mxu1 %vm3283_vm0, %v3282_v0 }
 0x2f5   :  { %2817 = vmatprep.subr.mxu1 %v3282_v0 }
 0x2f6   :  { %2818 = vmatpush3.msra.mxu1 %v3356_v47 }
 0x2f7   :  { %2819 = vmatprep.subr.mxu1 %v3282_v0 }
 0x2f8   :  { %2820 = vmatpush3.msra.mxu1 %v3359_v49 }
 0x2f9   :  { %2821 = vmatprep.subr.mxu1 %v3282_v0 }
 0x2fa   :  { %2822 = vmatpush3.msra.mxu1 %v3370_v54 }
 0x2fb   :  { %2826 = vmatprep.subr.mxu1 %v3282_v0 }
 0x3b3   :  { %v434_v13 = vpop.f32.mrf.mxu1 }
 0x3b4   :  { %v435_v14 = vadd.f32 %v434_v13, %v264_v4  ;;  %v166_v13 = vadd.f32 %v3402_v62, %v3345_v30 }
 0x3b5   :  { %v2814_v15 = vpop.f32.mrf.mxu1 }
 0x3b6   :  { %v438_v16 = vadd.f32 %v435_v14, %v3425_v12 }
 0x3b8   :  { %3083 = vtanh.f32 %v438_v16  ;;  %v2538_v18 = vmul.f32 -1.442695, %v438_v16 }
 0x3ba   :  { %3085 = vpow2.f32 %v2538_v18 }
 0x3c5   :  { %v3084_v17 = vpop.eup %3083 }
 0x3c6   :  { %448 = vrot.lane.b32.xlu0 %v3084_v17, %s3284_s0 }
 0x3c7   :  { %v3086_v19 = vpop.eup %3085 }
 0x3c8   :  { %v442_v20 = vadd.f32 1.0, %v3086_v19 }
 0x3ca   :  { %3087 = vrcp.f32 %v442_v20 }
 0x3d7   :  { %v3088_v21 = vpop.eup %3087 }
 0x3d8   :  { %v446_v24 = vmul.f32 0.0, %v3088_v21 }
 0x438   :  { %v449_v22 = vpop.permute.xlu0 %448 }
 0x439   :  { %v451_v23 = vmul.f32 %v3088_v21, %v449_v22 }
 0x43b   :  { %453 = vrot.lane.b32.xlu1 %v451_v23, %s3285_s1 }
 0x4ad   :  { %v454_v25 = vpop.permute.xlu1 %453 }
 0x4ae   :  { %v3430_v27 = vadd.f32 %v454_v25, %v446_v24 }
 0x4b0   :  { %3089 = vtanh.f32 %v3430_v27 }
 0x4bd   :  { %v3090_v28 = vpop.eup %3089 }
 0x4be   :  { %459 = vrot.lane.b32.xlu0 %v3090_v28, %s3284_s0 }
 0x530   :  { %v460_v31 = vpop.permute.xlu0 %459 }
 0x531   :  { %v3434_v32 = vmul.f32 %v3088_v21, %v460_v31 }
 0x533   :  { %464 = vrot.lane.b32.xlu1 %v3434_v32, %s3285_s1 }
 0x5a5   :  { %v465_v33 = vpop.permute.xlu1 %464 }
 0x5a6   :  { %2824 = vmatmul.mubr.msk.f32.vlgmr.msra.gmra.mxu1 %vm194_vm1, %v465_v33 }
 0x5a7   :  { %2827 = vmatpush3.msra.mxu1 %v3317_v5  ;;  %2834 = vmatprep.mubr.msk.f32.mxu1 %vm3283_vm0, %v3282_v0 }
 0x5a8   :  { %2828 = vmatprep.subr.mxu1 %v3282_v0 }
 0x5a9   :  { %2829 = vmatpush3.msra.mxu1 %v3320_v6 }
 0x5aa   :  { %2830 = vmatprep.subr.mxu1 %v3282_v0 }
 0x5ab   :  { %2831 = vmatpush3.msra.mxu1 %v3324_v9 }
 0x5ac   :  { %2832 = vmatprep.subr.mxu1 %v3282_v0 }
 0x5ad   :  { %2833 = vmatpush3.msra.mxu1 %v3327_v11 }
 0x5ae   :  { %2835 = vmatmul.mubr.msk.f32.vlgmr.msra.gmra.mxu1 %vm194_vm1, %v365_v8  ;;  %2848 = vmatprep.subr.mxu1 %v3282_v0 }
 0x5af   :  { %2849 = vmatpush3.msra.mxu1 %v3353_v44  ;;  %2856 = vmatprep.mubr.msk.f32.mxu1 %vm3283_vm0, %v3282_v0 }
 0x5b0   :  { %2850 = vmatprep.subr.mxu1 %v3282_v0 }
 0x5b1   :  { %2851 = vmatpush3.msra.mxu1 %v3356_v47 }
 0x5b2   :  { %2852 = vmatprep.subr.mxu1 %v3282_v0 }
 0x5b3   :  { %2853 = vmatpush3.msra.mxu1 %v3359_v49 }
 0x5b4   :  { %2854 = vmatprep.subr.mxu1 %v3282_v0 }
 0x5b5   :  { %2855 = vmatpush3.msra.mxu1 %v3370_v54 }
 0x5b6   :  { %2870 = vmatprep.subr.mxu1 %v3282_v0 }
 0x666   :  { %v534_v34 = vpop.f32.mrf.mxu1 }
 0x668   :  { %v2825_v35 = vpop.f32.mrf.mxu1 }
 0x66e   :  { %v604_v37 = vpop.f32.mrf.mxu1 }
 0x66f   :  { %v608_v38 = vadd.f32 %v604_v37, %v161_v36 }
 0x670   :  { %v2836_v39 = vpop.f32.mrf.mxu1 }
 0x671   :  { %3091 = vtanh.f32 %v608_v38  ;;  %v2541_v41 = vmul.f32 -1.442695, %v608_v38 }
 0x673   :  { %3093 = vpow2.f32 %v2541_v41 }
 0x67e   :  { %v3092_v40 = vpop.eup %3091 }
 0x67f   :  { %618 = vrot.lane.b32.xlu0 %v3092_v40, %s3284_s0 }
 0x680   :  { %v3094_v42 = vpop.eup %3093 }
 0x681   :  { %v612_v45 = vadd.f32 1.0, %v3094_v42 }
 0x683   :  { %3095 = vrcp.f32 %v612_v45 }
 0x690   :  { %v3096_v46 = vpop.eup %3095 }
 0x691   :  { %v616_v52 = vmul.f32 %v3096_v46, %v3350_v43 }
 0x6f1   :  { %v619_v48 = vpop.permute.xlu0 %618 }
 0x6f2   :  { %v621_v51 = vmul.f32 %v3096_v46, %v619_v48 }
 0x6f4   :  { %623 = vrot.lane.b32.xlu1 %v621_v51, %s3285_s1 }
 0x766   :  { %v624_v29 = vpop.permute.xlu1 %623 }
 0x767   :  { %v3465_v56 = vadd.f32 %v624_v29, %v616_v52 }
 0x769   :  { %3097 = vtanh.f32 %v3465_v56 }
 0x776   :  { %v3098_v58 = vpop.eup %3097 }
 0x777   :  { %629 = vrot.lane.b32.xlu0 %v3098_v58, %s3284_s0 }
 0x7e9   :  { %v630_v59 = vpop.permute.xlu0 %629 }
 0x7ea   :  { %v632_v60 = vmul.f32 %v3096_v46, %v630_v59 }
 0x7ec   :  { %634 = vrot.lane.b32.xlu1 %v632_v60, %s3285_s1 }
 0x85e   :  { %v635_v4 = vpop.permute.xlu1 %634 }
 0x85f   :  { %2846 = vmatmul.mubr.msk.f32.vlgmr.msra.gmra.mxu0 %vm194_vm1, %v635_v4 }
 0x860   :  { %2860 = vmatpush3.msra.mxu0 %v3317_v5  ;;  %2867 = vmatprep.mubr.msk.f32.mxu0 %vm3283_vm0, %v3282_v0 }
 0x861   :  { %2861 = vmatprep.subr.mxu0 %v3282_v0 }
 0x862   :  { %2862 = vmatpush3.msra.mxu0 %v3320_v6 }
 0x863   :  { %2863 = vmatprep.subr.mxu0 %v3282_v0 }
 0x864   :  { %2864 = vmatpush3.msra.mxu0 %v3324_v9 }
 0x865   :  { %2865 = vmatprep.subr.mxu0 %v3282_v0 }
 0x866   :  { %2866 = vmatpush3.msra.mxu0 %v3327_v11 }
 0x867   :  { %2868 = vmatmul.mubr.msk.f32.vlgmr.msra.gmra.mxu0 %vm194_vm1, %v635_v4  ;;  %2881 = vmatprep.subr.mxu0 %v3282_v0 }
 0x868   :  { %2882 = vmatpush3.msra.mxu0 %v3353_v44  ;;  %2889 = vmatprep.mubr.msk.f32.mxu0 %vm3283_vm0, %v3282_v0 }
 0x869   :  { %2883 = vmatprep.subr.mxu0 %v3282_v0 }
 0x86a   :  { %2884 = vmatpush3.msra.mxu0 %v3356_v47 }
 0x86b   :  { %2885 = vmatprep.subr.mxu0 %v3282_v0 }
 0x86c   :  { %2886 = vmatpush3.msra.mxu0 %v3359_v49 }
 0x86d   :  { %2887 = vmatprep.subr.mxu0 %v3282_v0 }
 0x86e   :  { %2888 = vmatpush3.msra.mxu0 %v3370_v54 }
 0x86f   :  { %2903 = vmatprep.subr.mxu0 %v3282_v0 }
 0x91f   :  { %v704_v43 = vpop.f32.mrf.mxu0 }
 0x920   :  { %v705_v7 = vadd.f32 %v704_v43, %v534_v34  ;;  %v171_v43 = vadd.f32 %v3400_v61, %v3345_v30 }
 0x921   :  { %v2847_v8 = vpop.f32.mrf.mxu0 }
 0x922   :  { %v708_v10 = vadd.f32 %v705_v7, %v3425_v12 }
 0x924   :  { %3099 = vtanh.f32 %v708_v10  ;;  %v2543_v19 = vmul.f32 -1.442695, %v708_v10 }
 0x927   :  { %v874_v14 = vpop.f32.mrf.mxu0 }
 0x928   :  { %v878_v15 = vadd.f32 %v874_v14, %v166_v13 }
 0x929   :  { %v2869_v16 = vpop.f32.mrf.mxu0 }
 0x92a   :  { %3101 = vtanh.f32 %v878_v15  ;;  %v2546_v20 = vmul.f32 -1.442695, %v878_v15 }
 0x92b   :  { %3103 = vpow2.f32 %v2543_v19 }
 0x92c   :  { %3105 = vpow2.f32 %v2546_v20 }
 0x931   :  { %v3100_v17 = vpop.eup %3099 }
 0x932   :  { %718 = vrot.lane.b32.xlu0 %v3100_v17, %s3284_s0 }
 0x937   :  { %v3102_v18 = vpop.eup %3101 }
 0x938   :  { %888 = vrot.lane.b32.xlu1 %v3102_v18, %s3284_s0  ;;  %v3104_v21 = vpop.eup %3103 }
 0x939   :  { %v712_v22 = vadd.f32 1.0, %v3104_v21  ;;  %v3106_v23 = vpop.eup %3105 }
 0x93a   :  { %v882_v24 = vadd.f32 1.0, %v3106_v23 }
 0x93b   :  { %3107 = vrcp.f32 %v712_v22 }
 0x93c   :  { %3109 = vrcp.f32 %v882_v24 }
 0x948   :  { %v3108_v62 = vpop.eup %3107 }
 0x949   :  { %v3110_v31 = vpop.eup %3109  ;;  %v716_v35 = vmul.f32 %v3108_v62, %v3430_v27 }
 0x94a   :  { %v886_v38 = vmul.f32 %v3110_v31, %v3465_v56 }
 0x9a4   :  { %v719_v25 = vpop.permute.xlu0 %718 }
 0x9a5   :  { %v721_v28 = vmul.f32 %v3108_v62, %v719_v25 }
 0x9a7   :  { %723 = vrot.lane.b32.xlu0 %v721_v28, %s3285_s1 }
 0x9aa   :  { %v889_v33 = vpop.permute.xlu1 %888 }
 0x9ab   :  { %v891_v34 = vmul.f32 %v3110_v31, %v889_v33 }
 0x9ad   :  { %893 = vrot.lane.b32.xlu1 %v891_v34, %s3285_s1 }
 0xa19   :  { %v724_v36 = vpop.permute.xlu0 %723 }
 0xa1a   :  { %v3500_v37 = vadd.f32 %v724_v36, %v716_v35 }
 0xa1c   :  { %3111 = vtanh.f32 %v3500_v37 }
 0xa1f   :  { %v894_v39 = vpop.permute.xlu1 %893 }
 0xa20   :  { %v3504_v40 = vadd.f32 %v894_v39, %v886_v38 }
 0xa22   :  { %3113 = vtanh.f32 %v3504_v40 }
 0xa29   :  { %v3112_v41 = vpop.eup %3111 }
 0xa2a   :  { %729 = vrot.lane.b32.xlu0 %v3112_v41, %s3284_s0 }
 0xa2f   :  { %v3114_v42 = vpop.eup %3113 }
 0xa30   :  { %899 = vrot.lane.b32.xlu1 %v3114_v42, %s3284_s0 }
 0xa9c   :  { %v730_v45 = vpop.permute.xlu0 %729 }
 0xa9d   :  { %v3509_v27 = vmul.f32 %v3108_v62, %v730_v45 }
 0xa9f   :  { %734 = vrot.lane.b32.xlu0 %v3509_v27, %s3285_s1 }
 0xaa2   :  { %v900_v46 = vpop.permute.xlu1 %899 }
 0xaa3   :  { %v902_v48 = vmul.f32 %v3110_v31, %v900_v46 }
 0xaa5   :  { %904 = vrot.lane.b32.xlu1 %v902_v48, %s3285_s1 }
 0xb11   :  { %v735_v51 = vpop.permute.xlu0 %734 }
 0xb12   :  { %2857 = vmatmul.mubr.msk.f32.vlgmr.msra.gmra.mxu1 %vm194_vm1, %v735_v51 }
 0xb13   :  { %2871 = vmatpush3.msra.mxu1 %v3361_v50  ;;  %2878 = vmatprep.mubr.msk.f32.mxu1 %vm3283_vm0, %v3282_v0 }
 0xb14   :  { %2872 = vmatprep.subr.mxu1 %v3282_v0 }
 0xb15   :  { %2873 = vmatpush3.msra.mxu1 %v3366_v53 }
 0xb16   :  { %2874 = vmatprep.subr.mxu1 %v3282_v0 }
 0xb17   :  { %2875 = vmatpush3.msra.mxu1 %v3373_v55  ;;  %v905_v52 = vpop.permute.xlu1 %904 }
 0xb18   :  { %2876 = vmatprep.subr.mxu1 %v3282_v0 }
 0xb19   :  { %2877 = vmatpush3.msra.mxu1 %v3379_v57 }
 0xb1a   :  { %2879 = vmatmul.mubr.msk.f32.vlgmr.msra.gmra.mxu1 %vm194_vm1, %v905_v52  ;;  %2892 = vmatprep.subr.mxu1 %v3282_v0 }
 0xb1b   :  { %2893 = vmatpush3.msra.mxu1 %v3317_v5  ;;  %2900 = vmatprep.mubr.msk.f32.mxu1 %vm3283_vm0, %v3282_v0 }
 0xb1c   :  { %2894 = vmatprep.subr.mxu1 %v3282_v0 }
 0xb1d   :  { %2895 = vmatpush3.msra.mxu1 %v3320_v6 }
 0xb1e   :  { %2896 = vmatprep.subr.mxu1 %v3282_v0 }
 0xb1f   :  { %2897 = vmatpush3.msra.mxu1 %v3324_v9 }
 0xb20   :  { %2898 = vmatprep.subr.mxu1 %v3282_v0 }
 0xb21   :  { %2899 = vmatpush3.msra.mxu1 %v3327_v11 }
 0xb22   :  { %2901 = vmatmul.mubr.msk.f32.vlgmr.msra.gmra.mxu1 %vm194_vm1, %v905_v52  ;;  %2914 = vmatprep.subr.mxu1 %v3282_v0 }
 0xb23   :  { %2915 = vmatpush3.msra.mxu1 %v3353_v44  ;;  %2922 = vmatprep.mubr.msk.f32.mxu1 %vm3283_vm0, %v3282_v0 }
 0xb24   :  { %2916 = vmatprep.subr.mxu1 %v3282_v0 }
 0xb25   :  { %2917 = vmatpush3.msra.mxu1 %v3356_v47 }
 0xb26   :  { %2918 = vmatprep.subr.mxu1 %v3282_v0 }
 0xb27   :  { %2919 = vmatpush3.msra.mxu1 %v3359_v49 }
 0xb28   :  { %2920 = vmatprep.subr.mxu1 %v3282_v0 }
 0xb29   :  { %2921 = vmatpush3.msra.mxu1 %v3370_v54 }
 0xb2a   :  { %2936 = vmatprep.subr.mxu1 %v3282_v0 }
 0xbd2   :  { %v804_v29 = vpop.f32.mrf.mxu1 }
 0xbd4   :  { %v2858_v56 = vpop.f32.mrf.mxu1 }
 0xbda   :  { %v974_v58 = vpop.f32.mrf.mxu1 }
 0xbdb   :  { %v975_v59 = vadd.f32 %v974_v58, %v804_v29  ;;  %v176_v58 = vadd.f32 %v3406_v1, %v3345_v30 }
 0xbdc   :  { %v2880_v60 = vpop.f32.mrf.mxu1 }
 0xbdd   :  { %v978_v4 = vadd.f32 %v975_v59, %v3425_v12 }
 0xbdf   :  { %3115 = vtanh.f32 %v978_v4  ;;  %v2548_v15 = vmul.f32 -1.442695, %v978_v4 }
 0xbe2   :  { %v1144_v7 = vpop.f32.mrf.mxu1 }
 0xbe3   :  { %v1148_v8 = vadd.f32 %v1144_v7, %v171_v43 }
 0xbe4   :  { %v2902_v10 = vpop.f32.mrf.mxu1 }
 0xbe5   :  { %3117 = vtanh.f32 %v1148_v8  ;;  %v2551_v16 = vmul.f32 -1.442695, %v1148_v8 }
 0xbe6   :  { %3119 = vpow2.f32 %v2548_v15 }
 0xbe7   :  { %3121 = vpow2.f32 %v2551_v16 }
 0xbec   :  { %v3116_v13 = vpop.eup %3115 }
 0xbed   :  { %988 = vrot.lane.b32.xlu0 %v3116_v13, %s3284_s0 }
 0xbf2   :  { %v3118_v14 = vpop.eup %3117 }
 0xbf3   :  { %1158 = vrot.lane.b32.xlu1 %v3118_v14, %s3284_s0  ;;  %v3120_v17 = vpop.eup %3119 }
 0xbf4   :  { %v982_v18 = vadd.f32 1.0, %v3120_v17  ;;  %v3122_v19 = vpop.eup %3121 }
 0xbf5   :  { %v1152_v20 = vadd.f32 1.0, %v3122_v19 }
 0xbf6   :  { %3123 = vrcp.f32 %v982_v18 }
 0xbf7   :  { %3125 = vrcp.f32 %v1152_v20 }
 0xc03   :  { %v3124_v61 = vpop.eup %3123 }
 0xc04   :  { %v3126_v23 = vpop.eup %3125  ;;  %v986_v25 = vmul.f32 %v3124_v61, %v3500_v37 }
 0xc05   :  { %v1156_v33 = vmul.f32 %v3126_v23, %v3504_v40 }
 0xc5f   :  { %v989_v21 = vpop.permute.xlu0 %988 }
 0xc60   :  { %v991_v22 = vmul.f32 %v3124_v61, %v989_v21 }
 0xc62   :  { %993 = vrot.lane.b32.xlu0 %v991_v22, %s3285_s1 }
 0xc65   :  { %v1159_v24 = vpop.permute.xlu1 %1158 }
 0xc66   :  { %v1161_v62 = vmul.f32 %v3126_v23, %v1159_v24 }
 0xc68   :  { %1163 = vrot.lane.b32.xlu1 %v1161_v62, %s3285_s1 }
 0xcd4   :  { %v994_v28 = vpop.permute.xlu0 %993 }
 0xcd5   :  { %v3555_v31 = vadd.f32 %v994_v28, %v986_v25 }
 0xcd7   :  { %3127 = vtanh.f32 %v3555_v31 }
 0xcda   :  { %v1164_v34 = vpop.permute.xlu1 %1163 }
 0xcdb   :  { %v3559_v35 = vadd.f32 %v1164_v34, %v1156_v33 }
 0xcdd   :  { %3129 = vtanh.f32 %v3559_v35 }
 0xce4   :  { %v3128_v36 = vpop.eup %3127 }
 0xce5   :  { %999 = vrot.lane.b32.xlu0 %v3128_v36, %s3284_s0 }
 0xcea   :  { %v3130_v38 = vpop.eup %3129 }
 0xceb   :  { %1169 = vrot.lane.b32.xlu1 %v3130_v38, %s3284_s0 }
 0xd57   :  { %v1000_v39 = vpop.permute.xlu0 %999 }
 0xd58   :  { %v3564_v37 = vmul.f32 %v3124_v61, %v1000_v39 }
 0xd5a   :  { %1004 = vrot.lane.b32.xlu0 %v3564_v37, %s3285_s1 }
 0xd5d   :  { %v1170_v41 = vpop.permute.xlu1 %1169 }
 0xd5e   :  { %v1172_v42 = vmul.f32 %v3126_v23, %v1170_v41 }
 0xd60   :  { %1174 = vrot.lane.b32.xlu1 %v1172_v42, %s3285_s1 }
 0xdcc   :  { %v1005_v40 = vpop.permute.xlu0 %1004 }
 0xdcd   :  { %2890 = vmatmul.mubr.msk.f32.vlgmr.msra.gmra.mxu0 %vm194_vm1, %v1005_v40  ;;  %v181_v40 = vadd.f32 %v3404_v63, %v3345_v30 }
 0xdce   :  { %2904 = vmatpush3.msra.mxu0 %v3361_v50  ;;  %2911 = vmatprep.mubr.msk.f32.mxu0 %vm3283_vm0, %v3282_v0 }
 0xdcf   :  { %2905 = vmatprep.subr.mxu0 %v3282_v0 }
 0xdd0   :  { %2906 = vmatpush3.msra.mxu0 %v3366_v53 }
 0xdd1   :  { %2907 = vmatprep.subr.mxu0 %v3282_v0 }
 0xdd2   :  { %2908 = vmatpush3.msra.mxu0 %v3373_v55  ;;  %v1175_v45 = vpop.permute.xlu1 %1174 }
 0xdd3   :  { %2909 = vmatprep.subr.mxu0 %v3282_v0 }
 0xdd4   :  { %2910 = vmatpush3.msra.mxu0 %v3379_v57 }
 0xdd5   :  { %2912 = vmatmul.mubr.msk.f32.vlgmr.msra.gmra.mxu0 %vm194_vm1, %v1175_v45  ;;  %2925 = vmatprep.subr.mxu0 %v3282_v0 }
 0xdd6   :  { %2926 = vmatpush3.msra.mxu0 %v3317_v5  ;;  %2933 = vmatprep.mubr.msk.f32.mxu0 %vm3283_vm0, %v3282_v0 }
 0xdd7   :  { %2927 = vmatprep.subr.mxu0 %v3282_v0 }
 0xdd8   :  { %2928 = vmatpush3.msra.mxu0 %v3320_v6 }
 0xdd9   :  { %2929 = vmatprep.subr.mxu0 %v3282_v0 }
 0xdda   :  { %2930 = vmatpush3.msra.mxu0 %v3324_v9 }
 0xddb   :  { %2931 = vmatprep.subr.mxu0 %v3282_v0 }
 0xddc   :  { %2932 = vmatpush3.msra.mxu0 %v3327_v11 }
 0xddd   :  { %2934 = vmatmul.mubr.msk.f32.vlgmr.msra.gmra.mxu0 %vm194_vm1, %v1175_v45  ;;  %2947 = vmatprep.subr.mxu0 %v3282_v0 }
 0xdde   :  { %2948 = vmatpush3.msra.mxu0 %v3353_v44  ;;  %2955 = vmatprep.mubr.msk.f32.mxu0 %vm3283_vm0, %v3282_v0 }
 0xddf   :  { %2949 = vmatprep.subr.mxu0 %v3282_v0 }
 0xde0   :  { %2950 = vmatpush3.msra.mxu0 %v3356_v47 }
 0xde1   :  { %2951 = vmatprep.subr.mxu0 %v3282_v0 }
 0xde2   :  { %2952 = vmatpush3.msra.mxu0 %v3359_v49 }
 0xde3   :  { %2953 = vmatprep.subr.mxu0 %v3282_v0 }
 0xde4   :  { %2954 = vmatpush3.msra.mxu0 %v3370_v54 }
 0xde5   :  { %2969 = vmatprep.subr.mxu0 %v3282_v0 }
 0xe8d   :  { %v1074_v46 = vpop.f32.mrf.mxu0 }
 0xe8f   :  { %v2891_v48 = vpop.f32.mrf.mxu0 }
 0xe95   :  { %v1244_v51 = vpop.f32.mrf.mxu0 }
 0xe96   :  { %v1245_v52 = vadd.f32 %v1244_v51, %v1074_v46 }
 0xe97   :  { %v2913_v29 = vpop.f32.mrf.mxu0 }
 0xe98   :  { %v1248_v56 = vadd.f32 %v1245_v52, %v3425_v12 }
 0xe9a   :  { %3131 = vtanh.f32 %v1248_v56  ;;  %v2553_v8 = vmul.f32 -1.442695, %v1248_v56 }
 0xe9d   :  { %v1414_v59 = vpop.f32.mrf.mxu0 }
 0xe9e   :  { %v1418_v60 = vadd.f32 %v1414_v59, %v176_v58 }
 0xe9f   :  { %v2935_v4 = vpop.f32.mrf.mxu0 }
 0xea0   :  { %3133 = vtanh.f32 %v1418_v60  ;;  %v2556_v10 = vmul.f32 -1.442695, %v1418_v60 }
 0xea1   :  { %3135 = vpow2.f32 %v2553_v8 }
 0xea2   :  { %3137 = vpow2.f32 %v2556_v10 }
 0xea7   :  { %v3132_v43 = vpop.eup %3131 }
 0xea8   :  { %1258 = vrot.lane.b32.xlu0 %v3132_v43, %s3284_s0 }
 0xead   :  { %v3134_v7 = vpop.eup %3133 }
 0xeae   :  { %1428 = vrot.lane.b32.xlu1 %v3134_v7, %s3284_s0  ;;  %v3136_v13 = vpop.eup %3135 }
 0xeaf   :  { %v1252_v14 = vadd.f32 1.0, %v3136_v13  ;;  %v3138_v15 = vpop.eup %3137 }
 0xeb0   :  { %v1422_v16 = vadd.f32 1.0, %v3138_v15 }
 0xeb1   :  { %3139 = vrcp.f32 %v1252_v14 }
 0xeb2   :  { %3141 = vrcp.f32 %v1422_v16 }
 0xebe   :  { %v3140_v1 = vpop.eup %3139 }
 0xebf   :  { %v3142_v19 = vpop.eup %3141  ;;  %v1256_v21 = vmul.f32 %v3140_v1, %v3555_v31 }
 0xec0   :  { %v1426_v24 = vmul.f32 %v3142_v19, %v3559_v35 }
 0xf1a   :  { %v1259_v17 = vpop.permute.xlu0 %1258 }
 0xf1b   :  { %v1261_v18 = vmul.f32 %v3140_v1, %v1259_v17 }
 0xf1d   :  { %1263 = vrot.lane.b32.xlu0 %v1261_v18, %s3285_s1 }
 0xf20   :  { %v1429_v20 = vpop.permute.xlu1 %1428 }
 0xf21   :  { %v1431_v61 = vmul.f32 %v3142_v19, %v1429_v20 }
 0xf23   :  { %1433 = vrot.lane.b32.xlu1 %v1431_v61, %s3285_s1 }
 0xf8f   :  { %v1264_v22 = vpop.permute.xlu0 %1263 }
 0xf90   :  { %v3610_v23 = vadd.f32 %v1264_v22, %v1256_v21 }
 0xf92   :  { %3143 = vtanh.f32 %v3610_v23 }
 0xf95   :  { %v1434_v62 = vpop.permute.xlu1 %1433 }
 0xf96   :  { %v3614_v25 = vadd.f32 %v1434_v62, %v1426_v24 }
 0xf98   :  { %3145 = vtanh.f32 %v3614_v25 }
 0xf9f   :  { %v3144_v28 = vpop.eup %3143 }
 0xfa0   :  { %1269 = vrot.lane.b32.xlu0 %v3144_v28, %s3284_s0 }
 0xfa5   :  { %v3146_v33 = vpop.eup %3145 }
 0xfa6   :  { %1439 = vrot.lane.b32.xlu1 %v3146_v33, %s3284_s0 }
0x1012   :  { %v1270_v34 = vpop.permute.xlu0 %1269 }
0x1013   :  { %v3619_v31 = vmul.f32 %v3140_v1, %v1270_v34 }
0x1015   :  { %1274 = vrot.lane.b32.xlu0 %v3619_v31, %s3285_s1 }
0x1018   :  { %v1440_v36 = vpop.permute.xlu1 %1439 }
0x1019   :  { %v1442_v38 = vmul.f32 %v3142_v19, %v1440_v36 }
0x101b   :  { %1444 = vrot.lane.b32.xlu1 %v1442_v38, %s3285_s1 }
0x1087   :  { %v1275_v35 = vpop.permute.xlu0 %1274 }
0x1088   :  { %2923 = vmatmul.mubr.msk.f32.vlgmr.msra.gmra.mxu1 %vm194_vm1, %v1275_v35 }
0x1089   :  { %2937 = vmatpush3.msra.mxu1 %v3361_v50  ;;  %2944 = vmatprep.mubr.msk.f32.mxu1 %vm3283_vm0, %v3282_v0 }
0x108a   :  { %2938 = vmatprep.subr.mxu1 %v3282_v0 }
0x108b   :  { %2939 = vmatpush3.msra.mxu1 %v3366_v53 }
0x108c   :  { %2940 = vmatprep.subr.mxu1 %v3282_v0 }
0x108d   :  { %2941 = vmatpush3.msra.mxu1 %v3373_v55  ;;  %v1445_v39 = vpop.permute.xlu1 %1444 }
0x108e   :  { %2942 = vmatprep.subr.mxu1 %v3282_v0 }
0x108f   :  { %2943 = vmatpush3.msra.mxu1 %v3379_v57 }
0x1090   :  { %2945 = vmatmul.mubr.msk.f32.vlgmr.msra.gmra.mxu1 %vm194_vm1, %v1445_v39  ;;  %2958 = vmatprep.subr.mxu1 %v3282_v0 }
0x1091   :  { %2959 = vmatpush3.msra.mxu1 %v3317_v5  ;;  %2966 = vmatprep.mubr.msk.f32.mxu1 %vm3283_vm0, %v3282_v0 }
0x1092   :  { %2960 = vmatprep.subr.mxu1 %v3282_v0 }
0x1093   :  { %2961 = vmatpush3.msra.mxu1 %v3320_v6 }
0x1094   :  { %2962 = vmatprep.subr.mxu1 %v3282_v0 }
0x1095   :  { %2963 = vmatpush3.msra.mxu1 %v3324_v9 }
0x1096   :  { %2964 = vmatprep.subr.mxu1 %v3282_v0 }
0x1097   :  { %2965 = vmatpush3.msra.mxu1 %v3327_v11 }
0x1098   :  { %2967 = vmatmul.mubr.msk.f32.vlgmr.msra.gmra.mxu1 %vm194_vm1, %v1445_v39  ;;  %2980 = vmatprep.subr.mxu1 %v3282_v0 }
0x1099   :  { %2981 = vmatpush3.msra.mxu1 %v3353_v44  ;;  %2988 = vmatprep.mubr.msk.f32.mxu1 %vm3283_vm0, %v3282_v0 }
0x109a   :  { %2982 = vmatprep.subr.mxu1 %v3282_v0 }
0x109b   :  { %2983 = vmatpush3.msra.mxu1 %v3356_v47 }
0x109c   :  { %2984 = vmatprep.subr.mxu1 %v3282_v0 }
0x109d   :  { %2985 = vmatpush3.msra.mxu1 %v3359_v49 }
0x109e   :  { %2986 = vmatprep.subr.mxu1 %v3282_v0 }
0x109f   :  { %2987 = vmatpush3.msra.mxu1 %v3370_v54 }
0x10a0   :  { %3002 = vmatprep.subr.mxu1 %v3282_v0 }
0x1148   :  { %v1344_v5 = vpop.f32.mrf.mxu1 }
0x114a   :  { %v2924_v6 = vpop.f32.mrf.mxu1 }
0x1150   :  { %v1514_v9 = vpop.f32.mrf.mxu1 }
0x1151   :  { %v1515_v11 = vadd.f32 %v1514_v9, %v1344_v5 }
0x1152   :  { %v2946_v41 = vpop.f32.mrf.mxu1 }
0x1153   :  { %v1518_v42 = vadd.f32 %v1515_v11, %v3425_v12 }
0x1155   :  { %3147 = vtanh.f32 %v1518_v42  ;;  %v2558_v29 = vmul.f32 -1.442695, %v1518_v42 }
0x1158   :  { %v1684_v45 = vpop.f32.mrf.mxu1 }
0x1159   :  { %v1688_v46 = vadd.f32 %v1684_v45, %v181_v40 }
0x115a   :  { %v2968_v48 = vpop.f32.mrf.mxu1 }
0x115b   :  { %3149 = vtanh.f32 %v1688_v46  ;;  %v2561_v56 = vmul.f32 -1.442695, %v1688_v46 }
0x115c   :  { %3151 = vpow2.f32 %v2558_v29 }
0x115d   :  { %3153 = vpow2.f32 %v2561_v56 }
0x1162   :  { %v3148_v51 = vpop.eup %3147 }
0x1163   :  { %1528 = vrot.lane.b32.xlu0 %v3148_v51, %s3284_s0 }
0x1168   :  { %v3150_v52 = vpop.eup %3149 }
0x1169   :  { %1698 = vrot.lane.b32.xlu1 %v3150_v52, %s3284_s0  ;;  %v3152_v58 = vpop.eup %3151 }
0x116a   :  { %v1522_v59 = vadd.f32 1.0, %v3152_v58  ;;  %v3154_v60 = vpop.eup %3153 }
0x116b   :  { %v1692_v4 = vadd.f32 1.0, %v3154_v60 }
0x116c   :  { %3155 = vrcp.f32 %v1522_v59 }
0x116d   :  { %3157 = vrcp.f32 %v1692_v4 }
0x1179   :  { %v3156_v63 = vpop.eup %3155 }
0x117a   :  { %v3158_v8 = vpop.eup %3157  ;;  %v1526_v14 = vmul.f32 %v3156_v63, %v3610_v23 }
0x117b   :  { %v1696_v1 = vmul.f32 %v3158_v8, %v3614_v25 }
0x11d5   :  { %v1529_v43 = vpop.permute.xlu0 %1528 }
0x11d6   :  { %v1531_v7 = vmul.f32 %v3156_v63, %v1529_v43 }
0x11d8   :  { %1533 = vrot.lane.b32.xlu0 %v1531_v7, %s3285_s1 }
0x11db   :  { %v1699_v10 = vpop.permute.xlu1 %1698 }
0x11dc   :  { %v1701_v13 = vmul.f32 %v3158_v8, %v1699_v10 }
0x11de   :  { %1703 = vrot.lane.b32.xlu1 %v1701_v13, %s3285_s1 }
0x124a   :  { %v1534_v15 = vpop.permute.xlu0 %1533 }
0x124b   :  { %v3665_v16 = vadd.f32 %v1534_v15, %v1526_v14  ;;  %v3743_v14 = vld [vmem:[#allocation5 + $0xb8] sm:$0xff]  ;;  %v3749_v15 = vld [vmem:[#allocation5 + $0xb0] sm:$0xff] }
0x124d   :  { %3159 = vtanh.f32 %v3665_v16 }
0x1250   :  { %v1704_v17 = vpop.permute.xlu1 %1703 }
0x1251   :  { %v3669_v18 = vadd.f32 %v1704_v17, %v1696_v1  ;;  %v3757_v17 = vld [vmem:[#allocation5 + $0xa0] sm:$0xff] }
0x1253   :  { %3161 = vtanh.f32 %v3669_v18 }
0x125a   :  { %v3160_v19 = vpop.eup %3159 }
0x125b   :  { %1539 = vrot.lane.b32.xlu0 %v3160_v19, %s3284_s0 }
0x1260   :  { %v3162_v20 = vpop.eup %3161 }
0x1261   :  { %1709 = vrot.lane.b32.xlu1 %v3162_v20, %s3284_s0 }
0x12cd   :  { %v1540_v61 = vpop.permute.xlu0 %1539 }
0x12ce   :  { %v3674_v21 = vmul.f32 %v3156_v63, %v1540_v61 }
0x12d0   :  { %1544 = vrot.lane.b32.xlu0 %v3674_v21, %s3285_s1 }
0x12d3   :  { %v1710_v22 = vpop.permute.xlu1 %1709 }
0x12d4   :  { %v1712_v23 = vmul.f32 %v3158_v8, %v1710_v22 }
0x12d6   :  { %1714 = vrot.lane.b32.xlu1 %v1712_v23, %s3285_s1 }
0x1342   :  { %v1545_v24 = vpop.permute.xlu0 %1544 }
0x1343   :  { %2956 = vmatmul.mubr.msk.f32.vlgmr.msra.gmra.mxu0 %vm194_vm1, %v1545_v24  ;;  %v191_v24 = vadd.f32 %v3408_v2, %v3345_v30 }
0x1344   :  { %2970 = vmatpush3.msra.mxu0 %v3361_v50  ;;  %2977 = vmatprep.mubr.msk.f32.mxu0 %vm3283_vm0, %v3282_v0  ;;  %v3691_v50 = vld [vmem:[#allocation5 + $0x98] sm:$0xff] }
0x1345   :  { %2971 = vmatprep.subr.mxu0 %v3282_v0 }
0x1346   :  { %2972 = vmatpush3.msra.mxu0 %v3366_v53  ;;  %v3697_v53 = vld [vmem:[#allocation5 + $0x90] sm:$0xff] }
0x1347   :  { %2973 = vmatprep.subr.mxu0 %v3282_v0 }
0x1348   :  { %2974 = vmatpush3.msra.mxu0 %v3373_v55  ;;  %v1715_v62 = vpop.permute.xlu1 %1714  ;;  %v3701_v55 = vld [vmem:[#allocation5 + $0x88] sm:$0xff] }
0x1349   :  { %2975 = vmatprep.subr.mxu0 %v3282_v0 }
0x134a   :  { %2976 = vmatpush3.msra.mxu0 %v3379_v57  ;;  %v3705_v57 = vld [vmem:[#allocation5 + $0x80] sm:$0xff] }
0x134b   :  { %2978 = vmatmul.mubr.msk.f32.vlgmr.msra.gmra.mxu0 %vm194_vm1, %v1715_v62  ;;  %2991 = vmatprep.subr.mxu0 %v3282_v0 }
0x134c   :  { %2992 = vmatpush3.msra.mxu0 %v3691_v50  ;;  %2999 = vmatprep.mubr.msk.f32.mxu0 %vm3283_vm0, %v3282_v0 }
0x134d   :  { %2993 = vmatprep.subr.mxu0 %v3282_v0 }
0x134e   :  { %2994 = vmatpush3.msra.mxu0 %v3697_v53 }
0x134f   :  { %2995 = vmatprep.subr.mxu0 %v3282_v0 }
0x1350   :  { %2996 = vmatpush3.msra.mxu0 %v3701_v55 }
0x1351   :  { %2997 = vmatprep.subr.mxu0 %v3282_v0 }
0x1352   :  { %2998 = vmatpush3.msra.mxu0 %v3705_v57 }
0x1353   :  { %3000 = vmatmul.mubr.msk.f32.vlgmr.msra.gmra.mxu0 %vm194_vm1, %v1715_v62  ;;  %3013 = vmatprep.subr.mxu0 %v3282_v0 }
0x1354   :  { %3014 = vmatpush3.msra.mxu0 %v3353_v44  ;;  %3021 = vmatprep.mubr.msk.f32.mxu0 %vm3283_vm0, %v3282_v0 }
0x1355   :  { %3015 = vmatprep.subr.mxu0 %v3282_v0 }
0x1356   :  { %3016 = vmatpush3.msra.mxu0 %v3356_v47  ;;  %v186_v47 = vadd.f32 %v3410_v3, %v3345_v30 }
0x1357   :  { %3017 = vmatprep.subr.mxu0 %v3282_v0 }
0x1358   :  { %3018 = vmatpush3.msra.mxu0 %v3359_v49 }
0x1359   :  { %3019 = vmatprep.subr.mxu0 %v3282_v0 }
0x135a   :  { %3020 = vmatpush3.msra.mxu0 %v3370_v54 }
0x135b   :  { %3035 = vmatprep.subr.mxu0 %v3282_v0 }
0x1403   :  { %v1614_v25 = vpop.f32.mrf.mxu0 }
0x1405   :  { %v2957_v28 = vpop.f32.mrf.mxu0 }
0x140b   :  { %v1784_v44 = vpop.f32.mrf.mxu0 }
0x140c   :  { %v1785_v33 = vadd.f32 %v1784_v44, %v1614_v25 }
0x140d   :  { %v2979_v34 = vpop.f32.mrf.mxu0 }
0x140e   :  { %v1788_v36 = vadd.f32 %v1785_v33, %v3425_v12 }
0x1410   :  { %3163 = vtanh.f32 %v1788_v36  ;;  %v2563_v5 = vmul.f32 -1.442695, %v1788_v36 }
0x1413   :  { %v1954_v38 = vpop.f32.mrf.mxu0 }
0x1414   :  { %v1958_v35 = vadd.f32 %v1954_v38, %v186_v47 }
0x1415   :  { %v3001_v49 = vpop.f32.mrf.mxu0 }
0x1416   :  { %3165 = vtanh.f32 %v1958_v35  ;;  %v2566_v6 = vmul.f32 -1.442695, %v1958_v35 }
0x1417   :  { %3167 = vpow2.f32 %v2563_v5 }
0x1418   :  { %3169 = vpow2.f32 %v2566_v6 }
0x141d   :  { %v3164_v39 = vpop.eup %3163 }
0x141e   :  { %1798 = vrot.lane.b32.xlu0 %v3164_v39, %s3284_s0 }
0x1423   :  { %v3166_v54 = vpop.eup %3165 }
0x1424   :  { %1968 = vrot.lane.b32.xlu1 %v3166_v54, %s3284_s0  ;;  %v3168_v9 = vpop.eup %3167 }
0x1425   :  { %v1792_v11 = vadd.f32 1.0, %v3168_v9  ;;  %v3170_v41 = vpop.eup %3169 }
0x1426   :  { %v1962_v42 = vadd.f32 1.0, %v3170_v41 }
0x1427   :  { %3171 = vrcp.f32 %v1792_v11 }
0x1428   :  { %3173 = vrcp.f32 %v1962_v42 }
0x1434   :  { %v3172_v3 = vpop.eup %3171 }
0x1435   :  { %v3174_v46 = vpop.eup %3173  ;;  %v1796_v52 = vmul.f32 %v3172_v3, %v3665_v16  ;;  %v3753_v16 = vld [vmem:[#allocation5 + $0xa8] sm:$0xff] }
0x1436   :  { %v1966_v58 = vmul.f32 %v3174_v46, %v3669_v18 }
0x1490   :  { %v1799_v40 = vpop.permute.xlu0 %1798 }
0x1491   :  { %v1801_v45 = vmul.f32 %v3172_v3, %v1799_v40 }
0x1493   :  { %1803 = vrot.lane.b32.xlu0 %v1801_v45, %s3285_s1 }
0x1496   :  { %v1969_v48 = vpop.permute.xlu1 %1968 }
0x1497   :  { %v1971_v51 = vmul.f32 %v3174_v46, %v1969_v48 }
0x1499   :  { %1973 = vrot.lane.b32.xlu1 %v1971_v51, %s3285_s1 }
0x1505   :  { %v1804_v29 = vpop.permute.xlu0 %1803 }
0x1506   :  { %v3728_v56 = vadd.f32 %v1804_v29, %v1796_v52 }
0x1508   :  { %3175 = vtanh.f32 %v3728_v56 }
0x150b   :  { %v1974_v59 = vpop.permute.xlu1 %1973 }
0x150c   :  { %v3732_v60 = vadd.f32 %v1974_v59, %v1966_v58 }
0x150e   :  { %3177 = vtanh.f32 %v3732_v60 }
0x1515   :  { %v3176_v4 = vpop.eup %3175 }
0x1516   :  { %1809 = vrot.lane.b32.xlu0 %v3176_v4, %s3284_s0 }
0x151b   :  { %v3178_v63 = vpop.eup %3177 }
0x151c   :  { %1979 = vrot.lane.b32.xlu1 %v3178_v63, %s3284_s0 }
0x1588   :  { %v1810_v43 = vpop.permute.xlu0 %1809 }
0x1589   :  { %v3737_v7 = vmul.f32 %v3172_v3, %v1810_v43 }
0x158b   :  { %1814 = vrot.lane.b32.xlu0 %v3737_v7, %s3285_s1 }
0x158e   :  { %v1980_v8 = vpop.permute.xlu1 %1979 }
0x158f   :  { %v1982_v10 = vmul.f32 %v3174_v46, %v1980_v8 }
0x1591   :  { %1984 = vrot.lane.b32.xlu1 %v1982_v10, %s3285_s1 }
0x15fd   :  { %v1815_v13 = vpop.permute.xlu0 %1814 }
0x15fe   :  { %2989 = vmatmul.mubr.msk.f32.vlgmr.msra.gmra.mxu1 %vm194_vm1, %v1815_v13 }
0x15ff   :  { %3003 = vmatpush3.msra.mxu1 %v3743_v14  ;;  %3010 = vmatprep.mubr.msk.f32.mxu1 %vm3283_vm0, %v3282_v0 }
0x1600   :  { %3004 = vmatprep.subr.mxu1 %v3282_v0 }
0x1601   :  { %3005 = vmatpush3.msra.mxu1 %v3749_v15 }
0x1602   :  { %3006 = vmatprep.subr.mxu1 %v3282_v0 }
0x1603   :  { %3007 = vmatpush3.msra.mxu1 %v3753_v16  ;;  %v1985_v1 = vpop.permute.xlu1 %1984 }
0x1604   :  { %3008 = vmatprep.subr.mxu1 %v3282_v0 }
0x1605   :  { %3009 = vmatpush3.msra.mxu1 %v3757_v17 }
0x1606   :  { %3011 = vmatmul.mubr.msk.f32.vlgmr.msra.gmra.mxu1 %vm194_vm1, %v1985_v1  ;;  %3024 = vmatprep.subr.mxu1 %v3282_v0 }
0x1607   :  { %3025 = vmatpush3.msra.mxu1 %v3691_v50  ;;  %3032 = vmatprep.mubr.msk.f32.mxu1 %vm3283_vm0, %v3282_v0 }
0x1608   :  { %3026 = vmatprep.subr.mxu1 %v3282_v0 }
0x1609   :  { %3027 = vmatpush3.msra.mxu1 %v3697_v53 }
0x160a   :  { %3028 = vmatprep.subr.mxu1 %v3282_v0 }
0x160b   :  { %3029 = vmatpush3.msra.mxu1 %v3701_v55 }
0x160c   :  { %3030 = vmatprep.subr.mxu1 %v3282_v0 }
0x160d   :  { %3031 = vmatpush3.msra.mxu1 %v3705_v57 }
0x160e   :  { %3033 = vmatmul.mubr.msk.f32.vlgmr.msra.gmra.mxu1 %vm194_vm1, %v1985_v1  ;;  %v71_v1 = vld [vmem:[#allocation5 + $0xf8] sm:$0xff] }
0x160f   :  { %3046 = vmatprep.subr.mxu1 %v71_v1 }
0x1610   :  { %3047 = vmatpush3.msra.mxu1 %v71_v1 }
0x16be   :  { %v1884_v18 = vpop.f32.mrf.mxu1 }
0x16c0   :  { %v2990_v19 = vpop.f32.mrf.mxu1 }
0x16c6   :  { %v2054_v20 = vpop.f32.mrf.mxu1 }
0x16c7   :  { %v2055_v61 = vadd.f32 %v2054_v20, %v1884_v18 }
0x16c8   :  { %v3012_v22 = vpop.f32.mrf.mxu1 }
0x16c9   :  { %v2058_v23 = vadd.f32 %v2055_v61, %v3425_v12  ;;  %v2354_v22 = vmax.f32 %v3509_v27, 0.0 }
0x16cb   :  { %3179 = vtanh.f32 %v2058_v23  ;;  %v2568_v25 = vmul.f32 -1.442695, %v2058_v23  ;;  %v2356_v23 = vmax.f32 %v3619_v31, 0.0 }
0x16ce   :  { %v2224_v62 = vpop.f32.mrf.mxu1 }
0x16cf   :  { %v2228_v50 = vadd.f32 %v2224_v62, %v191_v24  ;;  %v2358_v24 = vmax.f32 %v3737_v7, 0.0 }
0x16d0   :  { %v3034_v53 = vpop.f32.mrf.mxu1 }
0x16d1   :  { %3181 = vtanh.f32 %v2228_v50  ;;  %v2571_v28 = vmul.f32 -1.442695, %v2228_v50 }
0x16d2   :  { %3183 = vpow2.f32 %v2568_v25 }
0x16d3   :  { %3185 = vpow2.f32 %v2571_v28 }
0x16d8   :  { %v3180_v55 = vpop.eup %3179 }
0x16d9   :  { %2068 = vrot.lane.b32.xlu0 %v3180_v55, %s3284_s0 }
0x16de   :  { %v3182_v57 = vpop.eup %3181 }
0x16df   :  { %2238 = vrot.lane.b32.xlu1 %v3182_v57, %s3284_s0  ;;  %v3184_v44 = vpop.eup %3183 }
0x16e0   :  { %v2062_v33 = vadd.f32 1.0, %v3184_v44  ;;  %v3186_v34 = vpop.eup %3185  ;;  %v2363_v44 = vsub.s32 2, %v3337_v26 }
0x16e1   :  { %v2232_v36 = vadd.f32 1.0, %v3186_v34 }
0x16e2   :  { %3187 = vrcp.f32 %v2062_v33  ;;  %v3211_v33 = vld [vmem:[#allocation5 + $0x100] sm:$0xff] }
0x16e3   :  { %3189 = vrcp.f32 %v2232_v36  ;;  %v2364_v34 = vrot.slane %v3211_v33, %v2363_v44 }
0x16ef   :  { %v3188_v30 = vpop.eup %3187 }
0x16f0   :  { %v3190_v38 = vpop.eup %3189  ;;  %v2066_v39 = vmul.f32 %v3188_v30, %v3728_v56 }
0x16f1   :  { %v2236_v6 = vmul.f32 %v3190_v38, %v3732_v60 }
0x174b   :  { %v2069_v2 = vpop.permute.xlu0 %2068 }
0x174c   :  { %v2071_v47 = vmul.f32 %v3188_v30, %v2069_v2 }
0x174e   :  { %2073 = vrot.lane.b32.xlu0 %v2071_v47, %s3285_s1 }
0x1751   :  { %v2239_v35 = vpop.permute.xlu1 %2238 }
0x1752   :  { %v2241_v49 = vmul.f32 %v3190_v38, %v2239_v35 }
0x1754   :  { %2243 = vrot.lane.b32.xlu1 %v2241_v49, %s3285_s1 }
0x17c0   :  { %v2074_v54 = vpop.permute.xlu0 %2073 }
0x17c1   :  { %v2076_v5 = vadd.f32 %v2074_v54, %v2066_v39 }
0x17c3   :  { %3191 = vtanh.f32 %v2076_v5 }
0x17c6   :  { %v2244_v9 = vpop.permute.xlu1 %2243 }
0x17c7   :  { %v2246_v11 = vadd.f32 %v2244_v9, %v2236_v6 }
0x17c9   :  { %3193 = vtanh.f32 %v2246_v11 }
0x17d0   :  { %v3192_v41 = vpop.eup %3191 }
0x17d1   :  { %2079 = vrot.lane.b32.xlu0 %v3192_v41, %s3284_s0 }
0x17d6   :  { %v3194_v42 = vpop.eup %3193 }
0x17d7   :  { %2249 = vrot.lane.b32.xlu1 %v3194_v42, %s3284_s0 }
0x1843   :  { %v2080_v3 = vpop.permute.xlu0 %2079 }
0x1844   :  { %v2082_v40 = vmul.f32 %v3188_v30, %v2080_v3 }
0x1846   :  { %2084 = vrot.lane.b32.xlu0 %v2082_v40, %s3285_s1 }
0x1849   :  { %v2250_v45 = vpop.permute.xlu1 %2249 }
0x184a   :  { %v2252_v46 = vmul.f32 %v3190_v38, %v2250_v45 }
0x184c   :  { %2254 = vrot.lane.b32.xlu1 %v2252_v46, %s3285_s1 }
0x18b8   :  { %v2085_v48 = vpop.permute.xlu0 %2084 }
0x18b9   :  { %3022 = vmatmul.mubr.msk.f32.vlgmr.msra.gmra.mxu0 %vm194_vm1, %v2085_v48 }
0x18ba   :  { %3036 = vmatpush3.msra.mxu0 %v3743_v14  ;;  %3043 = vmatprep.mubr.msk.f32.mxu0 %vm3283_vm0, %v3282_v0  ;;  %v2353_v14 = vmax.f32 %v3434_v32, 0.0 }
0x18bb   :  { %3037 = vmatprep.subr.mxu0 %v3282_v0 }
0x18bc   :  { %3038 = vmatpush3.msra.mxu0 %v3749_v15  ;;  %v2357_v15 = vmax.f32 %v3674_v21, 0.0  ;;  %v68_v21 = vld [vmem:[#allocation5 + $0xe0] sm:$0xff] }
0x18bd   :  { %3039 = vmatprep.subr.mxu0 %v3282_v0 }
0x18be   :  { %3040 = vmatpush3.msra.mxu0 %v3753_v16  ;;  %v2255_v51 = vpop.permute.xlu1 %2254  ;;  %v2359_v16 = vmax.f32 %v2082_v40, 0.0 }
0x18bf   :  { %3041 = vmatprep.subr.mxu0 %v3282_v0 }
0x18c0   :  { %3042 = vmatpush3.msra.mxu0 %v3757_v17  ;;  %v70_v17 = vld [vmem:[#allocation5 + $0xf0] sm:$0xff] }
0x18c1   :  { %3044 = vmatmul.mubr.msk.f32.vlgmr.msra.gmra.mxu0 %vm194_vm1, %v2255_v51  ;;  %3048 = vmatprep.subr.mxu1 %v70_v17 }
0x18c2   :  { %3049 = vmatpush3.msra.mxu1 %v70_v17 }
0x1979   :  { %v2154_v52 = vpop.f32.mrf.mxu0 }
0x197b   :  { %v3023_v29 = vpop.f32.mrf.mxu0 }
0x1981   :  { %v2324_v56 = vpop.f32.mrf.mxu0 }
0x1982   :  { %v2325_v58 = vadd.f32 %v2324_v56, %v2154_v52 }
0x1983   :  { %v3045_v59 = vpop.f32.mrf.mxu0 }
0x1984   :  { %v2328_v60 = vadd.f32 %v2325_v58, %v3425_v12  ;;  %v2355_v12 = vmax.f32 %v3564_v37, 0.0  ;;  %v69_v37 = vld [vmem:[#allocation5 + $0xe8] sm:$0xff] }
0x1985   :  { %3050 = vmatprep.subr.mxu1 %v69_v37 }
0x1986   :  { %3195 = vtanh.f32 %v2328_v60  ;;  %v2573_v63 = vmul.f32 -1.442695, %v2328_v60  ;;  %3051 = vmatpush3.msra.mxu1 %v69_v37 }
0x1987   :  { %3052 = vmatprep.subr.mxu1 %v68_v21 }
0x1988   :  { %3197 = vpow2.f32 %v2573_v63  ;;  %3053 = vmatpush3.msra.mxu1 %v68_v21 }
0x1993   :  { %v3196_v4 = vpop.eup %3195 }
0x1994   :  { %2338 = vrot.lane.b32.xlu0 %v3196_v4, %s3284_s0 }
0x1995   :  { %v3198_v43 = vpop.eup %3197 }
0x1996   :  { %v2332_v8 = vadd.f32 1.0, %v3198_v43 }
0x1998   :  { %3199 = vrcp.f32 %v2332_v8 }
0x19a5   :  { %v3200_v0 = vpop.eup %3199 }
0x19a6   :  { %v2336_v32 = vmul.f32 %v3200_v0, %v2076_v5 }
0x1a06   :  { %v2339_v10 = vpop.permute.xlu0 %2338 }
0x1a07   :  { %v2341_v13 = vmul.f32 %v3200_v0, %v2339_v10 }
0x1a09   :  { %2343 = vrot.lane.b32.xlu1 %v2341_v13, %s3285_s1 }
0x1a0d   :  { %2373 = vrot.lane.b32.xlu1 %v2353_v14, %s3285_s1 }
0x1a11   :  { %2377 = vrot.lane.b32.xlu1 %v2355_v12, %s3285_s1 }
0x1a15   :  { %2381 = vrot.lane.b32.xlu1 %v2357_v15, %s3285_s1 }
0x1a19   :  { %2385 = vrot.lane.b32.xlu1 %v2359_v16, %s3285_s1 }
0x1a7b   :  { %v2344_v18 = vpop.permute.xlu1 %2343 }
0x1a7c   :  { %v2346_v19 = vadd.f32 %v2344_v18, %v2336_v32 }
0x1a7e   :  { %3201 = vtanh.f32 %v2346_v19 }
0x1a7f   :  { %v2374_v20 = vpop.permute.xlu1 %2373 }
0x1a80   :  { %3054 = vmatprep.mubr.msk.f32.mxu1 %vm194_vm1, %v2374_v20 }
0x1a83   :  { %v2378_v50 = vpop.permute.xlu1 %2377 }
0x1a87   :  { %v2382_v27 = vpop.permute.xlu1 %2381 }
0x1a8b   :  { %v3202_v61 = vpop.eup %3201  ;;  %v2386_v7 = vpop.permute.xlu1 %2385 }
0x1a8c   :  { %2349 = vrot.lane.b32.xlu0 %v3202_v61, %s3284_s0 }
0x1a90   :  { %2375 = vrot.lane.b32.xlu0 %v2354_v22, %s3285_s1 }
0x1a94   :  { %2379 = vrot.lane.b32.xlu0 %v2356_v23, %s3285_s1 }
0x1a98   :  { %2383 = vrot.lane.b32.xlu0 %v2358_v24, %s3285_s1 }
0x1afe   :  { %v2350_v62 = vpop.permute.xlu0 %2349 }
0x1aff   :  { %v2352_v53 = vmul.f32 %v3200_v0, %v2350_v62 }
0x1b01   :  { %v2360_v55 = vmax.f32 %v2352_v53, 0.0 }
0x1b02   :  { %v2376_v57 = vpop.permute.xlu0 %2375 }
0x1b03   :  { %2387 = vrot.lane.b32.xlu0 %v2360_v55, %s3285_s1  ;;  %3055 = vmatmul.mubr.msk.f32.vlgmr.msra.gmra.mxu1 %vm194_vm1, %v2376_v57 }
0x1b04   :  { %3057 = vmatprep.mubr.msk.f32.mxu1 %vm194_vm1, %v2378_v50 }
0x1b06   :  { %v2380_v25 = vpop.permute.xlu0 %2379 }
0x1b07   :  { %3058 = vmatmul.mubr.msk.f32.gmra.mxu1 %vm194_vm1, %v2380_v25 }
0x1b08   :  { %3060 = vmatprep.mubr.msk.f32.mxu1 %vm194_vm1, %v2382_v27 }
0x1b0a   :  { %v2384_v31 = vpop.permute.xlu0 %2383 }
0x1b0b   :  { %3061 = vmatmul.mubr.msk.f32.gmra.mxu1 %vm194_vm1, %v2384_v31 }
0x1b0c   :  { %3063 = vmatprep.mubr.msk.f32.mxu1 %vm194_vm1, %v2386_v7 }
0x1b75   :  { %v2388_v28 = vpop.permute.xlu0 %2387 }
0x1b76   :  { %3064 = vmatmul.mubr.msk.f32.gmra.mxu1 %vm194_vm1, %v2388_v28 }
0x1bc3   :  { %v3056_v36 = vpop.f32.mrf.mxu1 }
0x1bc4   :  { %v2477_v30 = vadd.f32 %v3056_v36, %v2364_v34 }
0x1bc5   :  { %v2471_v2 = vpop.f32.mrf.mxu1 }
0x1bc6   :  { %2511 = vst [vmem:[#allocation7 + $0x8] sm:$0xff] %v2477_v30  ;;  %v2472_v47 = vadd.f32 %v2471_v2, %v2364_v34 }
0x1bc7   :  { %v3059_v38 = vpop.f32.mrf.mxu1 }
0x1bc8   :  { %2510 = vst [vmem:[#allocation7] sm:$0xff] %v2472_v47  ;;  %v2487_v35 = vadd.f32 %v3059_v38, %v2364_v34 }
0x1bc9   :  { %v2481_v49 = vpop.f32.mrf.mxu1 }
0x1bca   :  { %2513 = vst [vmem:[#allocation7 + $0x18] sm:$0xff] %v2487_v35  ;;  %v2482_v39 = vadd.f32 %v2481_v49, %v2364_v34 }
0x1bcb   :  { %v3062_v54 = vpop.f32.mrf.mxu1 }
0x1bcc   :  { %2512 = vst [vmem:[#allocation7 + $0x10] sm:$0xff] %v2482_v39  ;;  %v2497_v5 = vadd.f32 %v3062_v54, %v2364_v34 }
0x1bcd   :  { %v2491_v6 = vpop.f32.mrf.mxu1 }
0x1bce   :  { %2515 = vst [vmem:[#allocation7 + $0x28] sm:$0xff] %v2497_v5  ;;  %v2492_v9 = vadd.f32 %v2491_v6, %v2364_v34 }
0x1bd0   :  { %2514 = vst [vmem:[#allocation7 + $0x20] sm:$0xff] %v2492_v9 }
0x1c36   :  { %v3065_v26 = vpop.f32.mrf.mxu1 }
0x1c37   :  { %v2507_v11 = vadd.f32 %v3065_v26, %v2364_v34 }
0x1c38   :  { %v2501_v41 = vpop.f32.mrf.mxu1 }
0x1c39   :  { %2517 = vst [vmem:[#allocation7 + $0x38] sm:$0xff] %v2507_v11  ;;  %v2502_v42 = vadd.f32 %v2501_v41, %v2364_v34 }
0x1c3b   :  { %2516 = vst [vmem:[#allocation7 + $0x30] sm:$0xff] %v2502_v42 }
0x1c3c   :  { %3263 = shalt.err (!%p3260_p0)
}
0x1c3d   :  { %2529 = dma.vmem_to_hbm [thread:$0]  %s2524_s22, 1024, %s3831_s2, [#allocation4], %s3279_s12, %s3279_s12, %s3280_s13  }
0x1c3e   :  { %3276 = dma.done.wait [#allocation4], 1024  }
0x1c3f   :  { %3277 = vsyncadd [#allocation4], 4294966272 }
0x1c40   :  { %2533 = vsyncpa [#allocation3], 1 }
0x1c41   :  { %2534 = vsyncpa [#allocation6], 1 }
0x1c42   :  { %2535 = vsyncpa [#allocation4], 1 }

</bundles_post_ra>
